<compile_context>
chip_gen: v7x
topology: tpu7x:2x2x1
jax: 0.10.0
libtpu: 0.0.40
codegen_flags: <defaults>
</compile_context>

<pallas_src>
import math
import functools

import jax
import jax.numpy as jnp
from jax.experimental import pallas as pl
from jax.experimental.pallas import tpu as pltpu


_NEG_INF = -1e30
_VMEM_LIMIT = 64 * 1024 * 1024   # explicit scoped-VMEM cap (fits v5e/v6e/v7x)


def _round_up(x: int, m: int) -> int:
    return (x + m - 1) // m * m


# ----------------------------------------------------------------------------
# Tiled GEMM kernel (bf16 inputs on the MXU, f32 VMEM accumulator)
# ----------------------------------------------------------------------------

def _matmul_kernel(x_ref, w_ref, o_ref, acc_ref):
    @pl.when(pl.program_id(2) == 0)
    def _():
        acc_ref[...] = jnp.zeros_like(acc_ref)

    acc_ref[...] += jnp.dot(x_ref[...], w_ref[...],
                            preferred_element_type=jnp.float32)

    @pl.when(pl.program_id(2) == pl.num_programs(2) - 1)
    def _():
        o_ref[...] = acc_ref[...].astype(o_ref.dtype)


def matmul_pallas(x, w, *, out_dtype=None, tm=512, tn=512, tk=1024):
    """x: (M, K), w: (K, N); weights are stored (in_features, out_features).
    Full-extent blocks for small dims, fixed tiles + zero-padding otherwise
    (padding is a no-op for standard LLama dims)."""
    M, K = x.shape
    K2, N = w.shape
    assert K == K2
    out_dtype = out_dtype or x.dtype

    tm_e = M if M <= tm else tm
    tn_e = N if N <= tn else tn
    tk_e = K if K <= tk else tk
    Mp, Np, Kp = _round_up(M, tm_e), _round_up(N, tn_e), _round_up(K, tk_e)
    if (Mp, Kp) != (M, K):
        x = jnp.pad(x, ((0, Mp - M), (0, Kp - K)))
    if (Kp, Np) != (K, N):
        w = jnp.pad(w, ((0, Kp - K), (0, Np - N)))

    out = pl.pallas_call(
        _matmul_kernel,
        out_shape=jax.ShapeDtypeStruct((Mp, Np), out_dtype),
        grid_spec=pltpu.PrefetchScalarGridSpec(
            num_scalar_prefetch=0,
            grid=(Mp // tm_e, Np // tn_e, Kp // tk_e),
            in_specs=[
                pl.BlockSpec((tm_e, tk_e), lambda i, j, k: (i, k)),
                pl.BlockSpec((tk_e, tn_e), lambda i, j, k: (k, j)),
            ],
            out_specs=pl.BlockSpec((tm_e, tn_e), lambda i, j, k: (i, j)),
            scratch_shapes=[pltpu.VMEM((tm_e, tn_e), jnp.float32)],
        ),
        compiler_params=pltpu.CompilerParams(
            dimension_semantics=("parallel", "parallel", "arbitrary"),
            vmem_limit_bytes=_VMEM_LIMIT),
    )(x, w)
    if (Mp, Np) != (M, N):
        out = out[:M, :N]
    return out


# ----------------------------------------------------------------------------
# Flash-attention kernel
#   grid = (B, Hkv, n_sq, n_t); q rows for a whole GQA group share one block
#   -> KV fetched once per group, MXU M-dim = n_rep * sq_tile.
# ----------------------------------------------------------------------------

def _flash_attn_kernel(q_ref, k_ref, v_ref, o_ref, m_sc, l_sc, acc_sc, *,
                       t_valid, t_tile, ragged):
    t = pl.program_id(3)

    @pl.when(t == 0)
    def _():
        m_sc[...] = jnp.full(m_sc.shape, _NEG_INF, jnp.float32)
        l_sc[...] = jnp.zeros_like(l_sc)
        acc_sc[...] = jnp.zeros_like(acc_sc)

    q = q_ref[0, 0]                         # (M, D) bf16; 1/sqrt(D) folded into Wq
    k = k_ref[0, 0]                         # (t_tile, D)
    v = v_ref[0, 0]                         # (t_tile, D)

    # contract last dims of both operands -> no explicit K transpose (XLU-free)
    s = jax.lax.dot_general(q, k, (((1,), (1,)), ((), ())),
                            preferred_element_type=jnp.float32)  # (M, t_tile)

    if ragged:
        # statically skipped when t_valid % t_tile == 0; only the final KV tile
        # actually has invalid columns (n_t is derived from t_valid).
        col = t * t_tile + jax.lax.broadcasted_iota(jnp.int32, s.shape, 1)
        s = jnp.where(col < t_valid, s, _NEG_INF)

    m_prev = m_sc[...]
    m_new = jnp.maximum(m_prev, jnp.max(s, axis=-1, keepdims=True))
    alpha = jnp.exp(m_prev - m_new)
    p = jnp.exp(s - m_new)
    l_sc[...] = alpha * l_sc[...] + jnp.sum(p, axis=-1, keepdims=True)
    acc_sc[...] = alpha * acc_sc[...] + jnp.dot(
        p.astype(v.dtype), v, preferred_element_type=jnp.float32)
    m_sc[...] = m_new

    @pl.when(t == pl.num_programs(3) - 1)
    def _():
        o_ref[0, 0] = (acc_sc[...] *
                       pl.reciprocal(l_sc[...], approx=True)).astype(o_ref.dtype)


def flash_attention_pallas(xq, k_cache, v_cache, *, t_valid,
                           sq_tile_pref=256, t_tile_pref=None):
    """xq: (B, S, Hq, D) straight from the QKV GEMM (Q pre-scaled).
    k_cache/v_cache: (maxB, Hkv, maxS, D) full cache (read in place).
    Returns (B*S, Hq*D), ready for the output GEMM."""
    B, S, Hq, D = xq.shape
    _, Hkv, maxS, _ = k_cache.shape
    n_rep = Hq // Hkv

    # ---- query tiling: bound VMEM / vreg pressure (critical at prefill) ----
    sq_tile = min(sq_tile_pref, _round_up(S, 16))
    while n_rep * sq_tile > 1024 and sq_tile > 16:
        sq_tile //= 2
    S_pad = _round_up(S, sq_tile)
    n_sq = S_pad // sq_tile
    M = n_rep * sq_tile                        # MXU M-dim per grid step

    # ---- KV tiling: 16-aligned, divides max_seq_len (decode gets big tiles) --
    if t_tile_pref is None:
        t_tile_pref = 512 if S > 16 else 1024
    t_tile = min(t_tile_pref, maxS)
    t_tile = max(16, t_tile - t_tile % 16)
    while t_tile > 16 and maxS % t_tile != 0:
        t_tile //= 2
    if maxS % t_tile != 0:
        # TODO(synk): only hit when max_seq_len is not 16-aligned; falls back to
        # a padded slice of the cache (extra HBM copy).
        padded = _round_up(t_valid, t_tile)
        k_cache = jnp.pad(k_cache[:, :, :t_valid],
                          ((0, 0), (0, 0), (0, padded - t_valid), (0, 0)))
        v_cache = jnp.pad(v_cache[:, :, :t_valid],
                          ((0, 0), (0, 0), (0, padded - t_valid), (0, 0)))
    n_t = (t_valid + t_tile - 1) // t_tile
    ragged = (t_valid % t_tile) != 0

    # ---- arrange q so each (group, sq-tile) block is contiguous:
    #      (B,S,Hq,D) -> (B, Hkv, n_sq, n_rep, sq_tile, D) -> (B, Hkv, n_sq*M, D)
    q = xq if S_pad == S else jnp.pad(xq, ((0, 0), (0, S_pad - S), (0, 0), (0, 0)))
    q = q.reshape(B, n_sq, sq_tile, Hkv, n_rep, D)
    q = jnp.transpose(q, (0, 3, 1, 4, 2, 5)).reshape(B, Hkv, n_sq * M, D)

    kernel = functools.partial(_flash_attn_kernel, t_valid=t_valid,
                               t_tile=t_tile, ragged=ragged)
    out = pl.pallas_call(
        kernel,
        out_shape=jax.ShapeDtypeStruct((B, Hkv, n_sq * M, D), xq.dtype),
        grid_spec=pltpu.PrefetchScalarGridSpec(
            num_scalar_prefetch=0,
            grid=(B, Hkv, n_sq, n_t),
            in_specs=[
                pl.BlockSpec((1, 1, M, D), lambda b, g, sq, t: (b, g, sq, 0)),
                pl.BlockSpec((1, 1, t_tile, D), lambda b, g, sq, t: (b, g, t, 0)),
                pl.BlockSpec((1, 1, t_tile, D), lambda b, g, sq, t: (b, g, t, 0)),
            ],
            out_specs=pl.BlockSpec((1, 1, M, D), lambda b, g, sq, t: (b, g, sq, 0)),
            scratch_shapes=[pltpu.VMEM((M, 1), jnp.float32),
                            pltpu.VMEM((M, 1), jnp.float32),
                            pltpu.VMEM((M, D), jnp.float32)],
        ),
        compiler_params=pltpu.CompilerParams(
            dimension_semantics=("parallel", "parallel", "parallel", "arbitrary"),
            vmem_limit_bytes=_VMEM_LIMIT),
    )(q, k_cache, v_cache)

    # unscramble to a (B*S, Hq*D) slab for the output GEMM.
    # TODO(synk): this head<->seq relayout could be folded into the flash-kernel
    # stores (2D lane-dense out_spec) at the cost of an in-kernel group transpose.
    out = out.reshape(B, Hkv, n_sq, n_rep, sq_tile, D)
    out = jnp.transpose(out, (0, 2, 4, 1, 3, 5)).reshape(B, S_pad, Hq * D)
    if S_pad != S:
        out = out[:, :S]
    return out.reshape(B * S, Hq * D)


# ----------------------------------------------------------------------------
# Plain-JAX glue (RoPE, cache slab write) + module wrapper
# ----------------------------------------------------------------------------

def apply_rotary_embeddings(x, freqs_cos, freqs_sin):
    """x: (B, S, H, D); freqs_*: (S, D//2). Matches torch.view_as_complex on
    (..., D//2, 2); math in f32, result cast back to x.dtype."""
    B, S, H, D = x.shape
    xf = x.astype(jnp.float32).reshape(B, S, H, D // 2, 2)
    x0, x1 = xf[..., 0], xf[..., 1]
    cos = freqs_cos[None, :, None, :]
    sin = freqs_sin[None, :, None, :]
    o0 = x0 * cos - x1 * sin
    o1 = x0 * sin + x1 * cos
    return jnp.stack([o0, o1], axis=-1).reshape(B, S, H, D).astype(x.dtype)


@functools.partial(jax.jit,
                   static_argnames=("start_pos", "n_heads_q", "n_heads_kv",
                                    "head_dim"),
                   donate_argnums=(2, 3))
def _forward(w_qkv, w_o, cache_k, cache_v, x, freqs_cos, freqs_sin, *,
             start_pos, n_heads_q, n_heads_kv, head_dim):
    B, S, dim = x.shape
    Hq, Hkv, D = n_heads_q, n_heads_kv, head_dim
    cdt = w_qkv.dtype                               # bf16 compute dtype

    # fused QKV projection (1/sqrt(D) is pre-folded into the Q columns of w_qkv)
    x2d = x.reshape(B * S, dim).astype(cdt)
    qkv = matmul_pallas(x2d, w_qkv, out_dtype=cdt)
    q_sz, kv_sz = Hq * D, Hkv * D
    xq = qkv[:, :q_sz].reshape(B, S, Hq, D)
    xk = qkv[:, q_sz:q_sz + kv_sz].reshape(B, S, Hkv, D)
    xv = qkv[:, q_sz + kv_sz:].reshape(B, S, Hkv, D)

    # rotary embeddings on K and V (NOT Q) — reference quirk reproduced exactly
    xk = apply_rotary_embeddings(xk, freqs_cos, freqs_sin)
    xv = apply_rotary_embeddings(xv, freqs_cos, freqs_sin)

    # KV-cache slab update; cache stored (maxB, Hkv, maxS, D), donated -> in place
    # TODO(synk): fuse rotary + transpose + cache write into one Pallas kernel
    # with input_output_aliases to remove the extra XLA relayout round trips.
    xk_t = jnp.transpose(xk, (0, 2, 1, 3)).astype(cache_k.dtype)
    xv_t = jnp.transpose(xv, (0, 2, 1, 3)).astype(cache_v.dtype)
    cache_k = jax.lax.dynamic_update_slice(cache_k, xk_t, (0, 0, start_pos, 0))
    cache_v = jax.lax.dynamic_update_slice(cache_v, xv_t, (0, 0, start_pos, 0))

    # flash attention over the cached sequence (GQA group batched per call)
    T = start_pos + S
    attn2d = flash_attention_pallas(xq, cache_k, cache_v, t_valid=T)

    # output projection
    out = matmul_pallas(attn2d, w_o, out_dtype=jnp.float32).reshape(B, S, dim)
    return out, cache_k, cache_v


class SelfAttentionPallas:
    def __init__(self, input_dim, n_heads, n_kv_heads, max_batch_size,
                 max_seq_len, key, compute_dtype=jnp.bfloat16):
        self.dim = input_dim
        self.n_heads_q = n_heads
        self.n_heads_kv = n_kv_heads if n_kv_heads is not None else n_heads
        self.head_dim = input_dim // n_heads
        self.n_rep = self.n_heads_q // self.n_heads_kv

        kq, kk, kv, ko = jax.random.split(key, 4)
        std = 0.02
        # torch Linear layout is (out_features, in_features); store weights
        # pre-transposed (in, out), fused for QKV, in bf16, with the attention
        # 1/sqrt(D) scale folded into the Q columns.
        wq = std * jax.random.normal(
            kq, (self.n_heads_q * self.head_dim, self.dim), jnp.float32)
        wk = std * jax.random.normal(
            kk, (self.n_heads_kv * self.head_dim, self.dim), jnp.float32)
        wv = std * jax.random.normal(
            kv, (self.n_heads_kv * self.head_dim, self.dim), jnp.float32)
        wo = std * jax.random.normal(
            ko, (self.dim, self.n_heads_q * self.head_dim), jnp.float32)
        scale = 1.0 / math.sqrt(self.head_dim)
        self.w_qkv = jnp.concatenate(
            [wq.T * scale, wk.T, wv.T], axis=1).astype(compute_dtype)
        self.w_o = wo.T.astype(compute_dtype)

        # unscaled f32 copies, only for the numerical sanity check below
        self._ref_w_qkv = jnp.concatenate([wq.T, wk.T, wv.T], axis=1)
        self._ref_w_o = wo.T

        # KV cache stored (maxB, Hkv, maxS, D) so the attention kernel reads it
        # directly via BlockSpecs (no repeat_kv / transpose / slice copy).
        self.cache_k = jnp.zeros(
            (max_batch_size, self.n_heads_kv, max_seq_len, self.head_dim),
            compute_dtype)
        self.cache_v = jnp.zeros_like(self.cache_k)

    def __call__(self, x, start_pos, freqs_cos, freqs_sin):
        out, self.cache_k, self.cache_v = _forward(
            self.w_qkv, self.w_o, self.cache_k, self.cache_v,
            x, freqs_cos, freqs_sin,
            start_pos=int(start_pos),
            n_heads_q=self.n_heads_q, n_heads_kv=self.n_heads_kv,
            head_dim=self.head_dim)
        return out


def make_freqs(head_dim, start_pos, seq_len, theta=10000.0):
    """cos/sin of rotary frequencies for positions [start_pos, start_pos+S)."""
    inv = 1.0 / (theta ** (jnp.arange(0, head_dim, 2, dtype=jnp.float32) / head_dim))
    t = jnp.arange(start_pos, start_pos + seq_len, dtype=jnp.float32)
    ang = jnp.outer(t, inv)                          # (S, head_dim//2)
    return jnp.cos(ang), jnp.sin(ang)


def _reference_forward(x, w_qkv_f32, w_o_f32, n_heads_q, n_heads_kv, head_dim,
                       start_pos, freqs_cos, freqs_sin):
    """Pure-JAX mirror of the PyTorch forward (f32), for a loose sanity check."""
    B, S, dim = x.shape
    Hq, Hkv, D = n_heads_q, n_heads_kv, head_dim
    qkv = x.reshape(B * S, dim) @ w_qkv_f32
    q_sz, kv_sz = Hq * D, Hkv * D
    xq = qkv[:, :q_sz].reshape(B, S, Hq, D)
    xk = qkv[:, q_sz:q_sz + kv_sz].reshape(B, S, Hkv, D)
    xv = qkv[:, q_sz + kv_sz:].reshape(B, S, Hkv, D)
    xk = apply_rotary_embeddings(xk, freqs_cos, freqs_sin)
    xv = apply_rotary_embeddings(xv, freqs_cos, freqs_sin)
    zeros = jnp.zeros((B, start_pos, Hkv, D), jnp.float32)   # cache starts at 0
    keys = jnp.repeat(jnp.concatenate([zeros, xk], axis=1), Hq // Hkv, axis=2)
    values = jnp.repeat(jnp.concatenate([zeros, xv], axis=1), Hq // Hkv, axis=2)
    q = jnp.transpose(xq, (0, 2, 1, 3))
    k = jnp.transpose(keys, (0, 2, 1, 3))
    v = jnp.transpose(values, (0, 2, 1, 3))
    s = jnp.einsum('bhqd,bhkd->bhqk', q, k) / math.sqrt(D)
    p = jax.nn.softmax(s, axis=-1)
    o = jnp.einsum('bhqk,bhkd->bhqd', p, v)
    o = jnp.transpose(o, (0, 2, 1, 3)).reshape(B * S, Hq * D)
    return (o @ w_o_f32).reshape(B, S, dim)


if __name__ == "__main__":
    # Small shapes consistent with the module: dim=32, 4 q-heads, 2 kv-heads,
    # head_dim=8, batch=2, seq=8, cache of length 16, start_pos=4.
    B, S, DIM = 2, 8, 32
    N_HEADS, N_KV_HEADS = 4, 2
    MAX_B, MAX_S = 2, 16
    START_POS = 4

    key = jax.random.PRNGKey(0)
    k_w, k_x = jax.random.split(key)

    attn = SelfAttentionPallas(DIM, N_HEADS, N_KV_HEADS, MAX_B, MAX_S, k_w)
    x = jax.random.normal(k_x, (B, S, DIM), jnp.float32)
    freqs_cos, freqs_sin = make_freqs(DIM // N_HEADS, START_POS, S)

    out = attn(x, START_POS, freqs_cos, freqs_sin)
    out = jax.block_until_ready(out)

    assert out.shape == (B, S, DIM), out.shape
    assert bool(jnp.all(jnp.isfinite(out)))

    # loose numerical check vs a pure-JAX f32 reference (kernel uses bf16 MXU
    # inputs with f32 accumulation, so tolerances are generous)
    ref = _reference_forward(
        x, attn._ref_w_qkv, attn._ref_w_o,
        N_HEADS, N_KV_HEADS, DIM // N_HEADS, START_POS, freqs_cos, freqs_sin)
    assert bool(jnp.allclose(out, ref, atol=5e-2, rtol=5e-2)), \
        float(jnp.max(jnp.abs(out - ref)))

    print("KERNEL_OK")
</pallas_src>

<mosaic_0001>
module attributes {stable_mosaic.version = 11 : i64} {
  func.func @_matmul_kernel(%arg0: i32, %arg1: i32, %arg2: i32, %arg3: memref<16x32xbf16, #tpu.memory_space<vmem>>, %arg4: memref<32x64xbf16, #tpu.memory_space<vmem>>, %arg5: memref<16x64xbf16, #tpu.memory_space<vmem>>, %arg6: memref<16x64xf32, #tpu.memory_space<vmem>>) attributes {dimension_semantics = [#tpu.dimension_semantics<parallel>, #tpu.dimension_semantics<parallel>, #tpu.dimension_semantics<arbitrary>], iteration_bounds = array<i64: 1, 1, 1>, scalar_prefetch = 0 : i64, scratch_operands = 1 : i64, tpu.core_type = #tpu.core_type<tc>, window_params = [{transform_indices = @transform_0, window_bounds = array<i64: 16, 32>}, {transform_indices = @transform_1, window_bounds = array<i64: 32, 64>}, {transform_indices = @transform_2, window_bounds = array<i64: 16, 64>}]} {
    %c0_i32 = arith.constant 0 : i32
    %0 = arith.cmpi eq, %arg2, %c0_i32 : i32
    %1 = arith.extui %0 : i1 to i32
    %c0_i32_0 = arith.constant 0 : i32
    %2 = arith.cmpi ne, %1, %c0_i32_0 : i32
    scf.if %2 {
      %cst_10 = arith.constant 0.000000e+00 : f32
      %12 = vector.broadcast %cst_10 : f32 to vector<16x64xf32>
      %c0_11 = arith.constant 0 : index
      %c0_12 = arith.constant 0 : index
      %13 = vector.load %arg6[%c0_11, %c0_12] : memref<16x64xf32, #tpu.memory_space<vmem>>, vector<16x64xf32>
      tpu.vector_store %arg6[%c0_11, %c0_12], %12 {strides = array<i32>} : memref<16x64xf32, #tpu.memory_space<vmem>>, vector<16x64xf32>,
    } else {
    }
    %c0 = arith.constant 0 : index
    %c0_1 = arith.constant 0 : index
    %3 = vector.load %arg6[%c0, %c0_1] : memref<16x64xf32, #tpu.memory_space<vmem>>, vector<16x64xf32>
    %c0_2 = arith.constant 0 : index
    %c0_3 = arith.constant 0 : index
    %4 = vector.load %arg3[%c0_2, %c0_3] : memref<16x32xbf16, #tpu.memory_space<vmem>>, vector<16x32xbf16>
    %c0_4 = arith.constant 0 : index
    %c0_5 = arith.constant 0 : index
    %5 = vector.load %arg4[%c0_4, %c0_5] : memref<32x64xbf16, #tpu.memory_space<vmem>>, vector<32x64xbf16>
    %cst = arith.constant dense<0.000000e+00> : vector<16x64xf32>
    %6 = tpu.matmul %4, %5, %cst {dimension_numbers = #tpu.dot_dimension_numbers<[1], [0], [0], [1], [0, 0, 1, 1], [], []>} : vector<16x32xbf16>, vector<32x64xbf16>, vector<16x64xf32> -> vector<16x64xf32>
    %7 = arith.addf %3, %6 : vector<16x64xf32>
    %c0_6 = arith.constant 0 : index
    %c0_7 = arith.constant 0 : index
    %8 = vector.load %arg6[%c0_6, %c0_7] : memref<16x64xf32, #tpu.memory_space<vmem>>, vector<16x64xf32>
    tpu.vector_store %arg6[%c0_6, %c0_7], %7 {strides = array<i32>} : memref<16x64xf32, #tpu.memory_space<vmem>>, vector<16x64xf32>,
    %c0_i32_8 = arith.constant 0 : i32
    %9 = arith.cmpi eq, %arg2, %c0_i32_8 : i32
    %10 = arith.extui %9 : i1 to i32
    %c0_i32_9 = arith.constant 0 : i32
    %11 = arith.cmpi ne, %10, %c0_i32_9 : i32
    scf.if %11 {
      %c0_10 = arith.constant 0 : index
      %c0_11 = arith.constant 0 : index
      %12 = vector.load %arg6[%c0_10, %c0_11] : memref<16x64xf32, #tpu.memory_space<vmem>>, vector<16x64xf32>
      %13 = arith.truncf %12 : vector<16x64xf32> to vector<16x64xbf16>
      %c0_12 = arith.constant 0 : index
      %c0_13 = arith.constant 0 : index
      %14 = vector.load %arg5[%c0_12, %c0_13] : memref<16x64xbf16, #tpu.memory_space<vmem>>, vector<16x64xbf16>
      tpu.vector_store %arg5[%c0_12, %c0_13], %13 {strides = array<i32>} : memref<16x64xbf16, #tpu.memory_space<vmem>>, vector<16x64xbf16>,
    } else {
    }
    return
  }
  func.func @transform_0(%arg0: i32, %arg1: i32, %arg2: i32) -> (i32, i32) {
    %c0_i32 = arith.constant 0 : i32
    return %arg0, %arg2 : i32, i32
  }
  func.func @transform_1(%arg0: i32, %arg1: i32, %arg2: i32) -> (i32, i32) {
    %c0_i32 = arith.constant 0 : i32
    return %arg2, %arg1 : i32, i32
  }
  func.func @transform_2(%arg0: i32, %arg1: i32, %arg2: i32) -> (i32, i32) {
    %c0_i32 = arith.constant 0 : i32
    return %arg0, %arg1 : i32, i32
  }
}

module attributes {stable_mosaic.version = 11 : i64} {
  func.func @_flash_attn_kernel(%arg0: i32, %arg1: i32, %arg2: i32, %arg3: i32, %arg4: memref<1x1x32x8xbf16, #tpu.memory_space<vmem>>, %arg5: memref<1x1x16x8xbf16, #tpu.memory_space<vmem>>, %arg6: memref<1x1x16x8xbf16, #tpu.memory_space<vmem>>, %arg7: memref<1x1x32x8xbf16, #tpu.memory_space<vmem>>, %arg8: memref<32x1xf32, #tpu.memory_space<vmem>>, %arg9: memref<32x1xf32, #tpu.memory_space<vmem>>, %arg10: memref<32x8xf32, #tpu.memory_space<vmem>>) attributes {dimension_semantics = [#tpu.dimension_semantics<parallel>, #tpu.dimension_semantics<parallel>, #tpu.dimension_semantics<parallel>, #tpu.dimension_semantics<arbitrary>], iteration_bounds = array<i64: 2, 2, 1, 1>, scalar_prefetch = 0 : i64, scratch_operands = 3 : i64, tpu.core_type = #tpu.core_type<tc>, window_params = [{transform_indices = @transform_0, window_bounds = array<i64: 1, 1, 32, 8>}, {transform_indices = @transform_1, window_bounds = array<i64: 1, 1, 16, 8>}, {transform_indices = @transform_2, window_bounds = array<i64: 1, 1, 16, 8>}, {transform_indices = @transform_3, window_bounds = array<i64: 1, 1, 32, 8>}]} {
    %c0_i32 = arith.constant 0 : i32
    %0 = arith.cmpi eq, %arg3, %c0_i32 : i32
    %1 = arith.extui %0 : i1 to i32
    %c0_i32_0 = arith.constant 0 : i32
    %2 = arith.cmpi ne, %1, %c0_i32_0 : i32
    scf.if %2 {
      %cst_30 = arith.constant -1.000000e+30 : f32
      %44 = vector.broadcast %cst_30 : f32 to vector<32x1xf32>
      %c0_31 = arith.constant 0 : index
      %c0_32 = arith.constant 0 : index
      %45 = vector.load %arg8[%c0_31, %c0_32] : memref<32x1xf32, #tpu.memory_space<vmem>>, vector<32x1xf32>
      tpu.vector_store %arg8[%c0_31, %c0_32], %44 {strides = array<i32>} : memref<32x1xf32, #tpu.memory_space<vmem>>, vector<32x1xf32>,
      %cst_33 = arith.constant 0.000000e+00 : f32
      %46 = vector.broadcast %cst_33 : f32 to vector<32x1xf32>
      %c0_34 = arith.constant 0 : index
      %c0_35 = arith.constant 0 : index
      %47 = vector.load %arg9[%c0_34, %c0_35] : memref<32x1xf32, #tpu.memory_space<vmem>>, vector<32x1xf32>
      tpu.vector_store %arg9[%c0_34, %c0_35], %46 {strides = array<i32>} : memref<32x1xf32, #tpu.memory_space<vmem>>, vector<32x1xf32>,
      %cst_36 = arith.constant 0.000000e+00 : f32
      %48 = vector.broadcast %cst_36 : f32 to vector<32x8xf32>
      %c0_37 = arith.constant 0 : index
      %c0_38 = arith.constant 0 : index
      %49 = vector.load %arg10[%c0_37, %c0_38] : memref<32x8xf32, #tpu.memory_space<vmem>>, vector<32x8xf32>
      tpu.vector_store %arg10[%c0_37, %c0_38], %48 {strides = array<i32>} : memref<32x8xf32, #tpu.memory_space<vmem>>, vector<32x8xf32>,
    } else {
    }
    %c0 = arith.constant 0 : index
    %c0_1 = arith.constant 0 : index
    %c0_2 = arith.constant 0 : index
    %c0_3 = arith.constant 0 : index
    %3 = vector.load %arg4[%c0, %c0_1, %c0_2, %c0_3] : memref<1x1x32x8xbf16, #tpu.memory_space<vmem>>, vector<1x1x32x8xbf16>
    %4 = vector.shape_cast %3 : vector<1x1x32x8xbf16> to vector<32x8xbf16>
    %c0_4 = arith.constant 0 : index
    %c0_5 = arith.constant 0 : index
    %c0_6 = arith.constant 0 : index
    %c0_7 = arith.constant 0 : index
    %5 = vector.load %arg5[%c0_4, %c0_5, %c0_6, %c0_7] : memref<1x1x16x8xbf16, #tpu.memory_space<vmem>>, vector<1x1x16x8xbf16>
    %6 = vector.shape_cast %5 : vector<1x1x16x8xbf16> to vector<16x8xbf16>
    %c0_8 = arith.constant 0 : index
    %c0_9 = arith.constant 0 : index
    %c0_10 = arith.constant 0 : index
    %c0_11 = arith.constant 0 : index
    %7 = vector.load %arg6[%c0_8, %c0_9, %c0_10, %c0_11] : memref<1x1x16x8xbf16, #tpu.memory_space<vmem>>, vector<1x1x16x8xbf16>
    %8 = vector.shape_cast %7 : vector<1x1x16x8xbf16> to vector<16x8xbf16>
    %cst = arith.constant dense<0.000000e+00> : vector<32x16xf32>
    %9 = tpu.matmul %4, %6, %cst {dimension_numbers = #tpu.dot_dimension_numbers<[1], [1], [0], [0], [0, 0, 1, 0], [], []>} : vector<32x8xbf16>, vector<16x8xbf16>, vector<32x16xf32> -> vector<32x16xf32>
    %c16_i32 = arith.constant 16 : i32
    %10 = arith.muli %arg3, %c16_i32 : i32
    %11 = tpu.iota {dimensions = array<i32: 1>} : vector<32x16xi32>
    %12 = vector.broadcast %10 : i32 to vector<32x16xi32>
    %13 = arith.addi %12, %11 : vector<32x16xi32>
    %c12_i32 = arith.constant 12 : i32
    %14 = vector.broadcast %c12_i32 : i32 to vector<32x16xi32>
    %15 = arith.cmpi slt, %13, %14 : vector<32x16xi32>
    %cst_12 = arith.constant -1.000000e+30 : f32
    %16 = vector.broadcast %cst_12 : f32 to vector<32x16xf32>
    %17 = arith.select %15, %9, %16 : vector<32x16xi1>, vector<32x16xf32>
    %c0_13 = arith.constant 0 : index
    %c0_14 = arith.constant 0 : index
    %18 = vector.load %arg8[%c0_13, %c0_14] : memref<32x1xf32, #tpu.memory_space<vmem>>, vector<32x1xf32>
    %cst_15 = arith.constant dense<0xFF800000> : vector<32xf32>
    %19 = vector.multi_reduction <maximumf>, %17, %cst_15 [1] : vector<32x16xf32> to vector<32xf32>
    %20 = vector.shape_cast %19 : vector<32xf32> to vector<32x1xf32>
    %21 = arith.maximumf %18, %20 : vector<32x1xf32>
    %22 = arith.subf %18, %21 : vector<32x1xf32>
    %23 = math.exp %22 : vector<32x1xf32>
    %24 = vector.broadcast %21 : vector<32x1xf32> to vector<32x16xf32>
    %25 = arith.subf %17, %24 : vector<32x16xf32>
    %26 = math.exp %25 : vector<32x16xf32>
    %c0_16 = arith.constant 0 : index
    %c0_17 = arith.constant 0 : index
    %27 = vector.load %arg9[%c0_16, %c0_17] : memref<32x1xf32, #tpu.memory_space<vmem>>, vector<32x1xf32>
    %28 = arith.mulf %23, %27 : vector<32x1xf32>
    %cst_18 = arith.constant dense<0.000000e+00> : vector<32xf32>
    %29 = vector.multi_reduction <add>, %26, %cst_18 [1] : vector<32x16xf32> to vector<32xf32>
    %30 = vector.shape_cast %29 : vector<32xf32> to vector<32x1xf32>
    %31 = arith.addf %28, %30 : vector<32x1xf32>
    %c0_19 = arith.constant 0 : index
    %c0_20 = arith.constant 0 : index
    %32 = vector.load %arg9[%c0_19, %c0_20] : memref<32x1xf32, #tpu.memory_space<vmem>>, vector<32x1xf32>
    tpu.vector_store %arg9[%c0_19, %c0_20], %31 {strides = array<i32>} : memref<32x1xf32, #tpu.memory_space<vmem>>, vector<32x1xf32>,
    %c0_21 = arith.constant 0 : index
    %c0_22 = arith.constant 0 : index
    %33 = vector.load %arg10[%c0_21, %c0_22] : memref<32x8xf32, #tpu.memory_space<vmem>>, vector<32x8xf32>
    %34 = vector.broadcast %23 : vector<32x1xf32> to vector<32x8xf32>
    %35 = arith.mulf %34, %33 : vector<32x8xf32>
    %36 = arith.truncf %26 : vector<32x16xf32> to vector<32x16xbf16>
    %cst_23 = arith.constant dense<0.000000e+00> : vector<32x8xf32>
    %37 = tpu.matmul %36, %8, %cst_23 {dimension_numbers = #tpu.dot_dimension_numbers<[1], [0], [0], [1], [0, 0, 1, 1], [], []>} : vector<32x16xbf16>, vector<16x8xbf16>, vector<32x8xf32> -> vector<32x8xf32>
    %38 = arith.addf %35, %37 : vector<32x8xf32>
    %c0_24 = arith.constant 0 : index
    %c0_25 = arith.constant 0 : index
    %39 = vector.load %arg10[%c0_24, %c0_25] : memref<32x8xf32, #tpu.memory_space<vmem>>, vector<32x8xf32>
    tpu.vector_store %arg10[%c0_24, %c0_25], %38 {strides = array<i32>} : memref<32x8xf32, #tpu.memory_space<vmem>>, vector<32x8xf32>,
    %c0_26 = arith.constant 0 : index
    %c0_27 = arith.constant 0 : index
    %40 = vector.load %arg8[%c0_26, %c0_27] : memref<32x1xf32, #tpu.memory_space<vmem>>, vector<32x1xf32>
    tpu.vector_store %arg8[%c0_26, %c0_27], %21 {strides = array<i32>} : memref<32x1xf32, #tpu.memory_space<vmem>>, vector<32x1xf32>,
    %c0_i32_28 = arith.constant 0 : i32
    %41 = arith.cmpi eq, %arg3, %c0_i32_28 : i32
    %42 = arith.extui %41 : i1 to i32
    %c0_i32_29 = arith.constant 0 : i32
    %43 = arith.cmpi ne, %42, %c0_i32_29 : i32
    scf.if %43 {
      %c0_30 = arith.constant 0 : index
      %c0_31 = arith.constant 0 : index
      %44 = vector.load %arg10[%c0_30, %c0_31] : memref<32x8xf32, #tpu.memory_space<vmem>>, vector<32x8xf32>
      %c0_32 = arith.constant 0 : index
      %c0_33 = arith.constant 0 : index
      %45 = vector.load %arg9[%c0_32, %c0_33] : memref<32x1xf32, #tpu.memory_space<vmem>>, vector<32x1xf32>
      %46 = tpu.reciprocal %45 {approx = true} : vector<32x1xf32> -> vector<32x1xf32>
      %47 = vector.broadcast %46 : vector<32x1xf32> to vector<32x8xf32>
      %48 = arith.mulf %44, %47 : vector<32x8xf32>
      %49 = arith.truncf %48 : vector<32x8xf32> to vector<32x8xbf16>
      %c0_34 = arith.constant 0 : index
      %c0_35 = arith.constant 0 : index
      %c0_36 = arith.constant 0 : index
      %c0_37 = arith.constant 0 : index
      %50 = vector.load %arg7[%c0_34, %c0_35, %c0_36, %c0_37] : memref<1x1x32x8xbf16, #tpu.memory_space<vmem>>, vector<1x1x32x8xbf16>
      %51 = vector.shape_cast %50 : vector<1x1x32x8xbf16> to vector<32x8xbf16>
      %52 = vector.shape_cast %49 : vector<32x8xbf16> to vector<1x1x32x8xbf16>
      tpu.vector_store %arg7[%c0_34, %c0_35, %c0_36, %c0_37], %52 {strides = array<i32>} : memref<1x1x32x8xbf16, #tpu.memory_space<vmem>>, vector<1x1x32x8xbf16>,
    } else {
    }
    return
  }
  func.func @transform_0(%arg0: i32, %arg1: i32, %arg2: i32, %arg3: i32) -> (i32, i32, i32, i32) {
    %c0_i32 = arith.constant 0 : i32
    %c0_i32_0 = arith.constant 0 : i32
    return %arg0, %arg1, %arg2, %c0_i32 : i32, i32, i32, i32
  }
  func.func @transform_1(%arg0: i32, %arg1: i32, %arg2: i32, %arg3: i32) -> (i32, i32, i32, i32) {
    %c0_i32 = arith.constant 0 : i32
    %c0_i32_0 = arith.constant 0 : i32
    return %arg0, %arg1, %arg3, %c0_i32 : i32, i32, i32, i32
  }
  func.func @transform_2(%arg0: i32, %arg1: i32, %arg2: i32, %arg3: i32) -> (i32, i32, i32, i32) {
    %c0_i32 = arith.constant 0 : i32
    %c0_i32_0 = arith.constant 0 : i32
    return %arg0, %arg1, %arg3, %c0_i32 : i32, i32, i32, i32
  }
  func.func @transform_3(%arg0: i32, %arg1: i32, %arg2: i32, %arg3: i32) -> (i32, i32, i32, i32) {
    %c0_i32 = arith.constant 0 : i32
    %c0_i32_0 = arith.constant 0 : i32
    return %arg0, %arg1, %arg2, %c0_i32 : i32, i32, i32, i32
  }
}

module attributes {stable_mosaic.version = 11 : i64} {
  func.func @_matmul_kernel(%arg0: i32, %arg1: i32, %arg2: i32, %arg3: memref<16x32xbf16, #tpu.memory_space<vmem>>, %arg4: memref<32x32xbf16, #tpu.memory_space<vmem>>, %arg5: memref<16x32xf32, #tpu.memory_space<vmem>>, %arg6: memref<16x32xf32, #tpu.memory_space<vmem>>) attributes {dimension_semantics = [#tpu.dimension_semantics<parallel>, #tpu.dimension_semantics<parallel>, #tpu.dimension_semantics<arbitrary>], iteration_bounds = array<i64: 1, 1, 1>, scalar_prefetch = 0 : i64, scratch_operands = 1 : i64, tpu.core_type = #tpu.core_type<tc>, window_params = [{transform_indices = @transform_0, window_bounds = array<i64: 16, 32>}, {transform_indices = @transform_1, window_bounds = array<i64: 32, 32>}, {transform_indices = @transform_2, window_bounds = array<i64: 16, 32>}]} {
    %c0_i32 = arith.constant 0 : i32
    %0 = arith.cmpi eq, %arg2, %c0_i32 : i32
    %1 = arith.extui %0 : i1 to i32
    %c0_i32_0 = arith.constant 0 : i32
    %2 = arith.cmpi ne, %1, %c0_i32_0 : i32
    scf.if %2 {
      %cst_10 = arith.constant 0.000000e+00 : f32
      %12 = vector.broadcast %cst_10 : f32 to vector<16x32xf32>
      %c0_11 = arith.constant 0 : index
      %c0_12 = arith.constant 0 : index
      %13 = vector.load %arg6[%c0_11, %c0_12] : memref<16x32xf32, #tpu.memory_space<vmem>>, vector<16x32xf32>
      tpu.vector_store %arg6[%c0_11, %c0_12], %12 {strides = array<i32>} : memref<16x32xf32, #tpu.memory_space<vmem>>, vector<16x32xf32>,
    } else {
    }
    %c0 = arith.constant 0 : index
    %c0_1 = arith.constant 0 : index
    %3 = vector.load %arg6[%c0, %c0_1] : memref<16x32xf32, #tpu.memory_space<vmem>>, vector<16x32xf32>
    %c0_2 = arith.constant 0 : index
    %c0_3 = arith.constant 0 : index
    %4 = vector.load %arg3[%c0_2, %c0_3] : memref<16x32xbf16, #tpu.memory_space<vmem>>, vector<16x32xbf16>
    %c0_4 = arith.constant 0 : index
    %c0_5 = arith.constant 0 : index
    %5 = vector.load %arg4[%c0_4, %c0_5] : memref<32x32xbf16, #tpu.memory_space<vmem>>, vector<32x32xbf16>
    %cst = arith.constant dense<0.000000e+00> : vector<16x32xf32>
    %6 = tpu.matmul %4, %5, %cst {dimension_numbers = #tpu.dot_dimension_numbers<[1], [0], [0], [1], [0, 0, 1, 1], [], []>} : vector<16x32xbf16>, vector<32x32xbf16>, vector<16x32xf32> -> vector<16x32xf32>
    %7 = arith.addf %3, %6 : vector<16x32xf32>
    %c0_6 = arith.constant 0 : index
    %c0_7 = arith.constant 0 : index
    %8 = vector.load %arg6[%c0_6, %c0_7] : memref<16x32xf32, #tpu.memory_space<vmem>>, vector<16x32xf32>
    tpu.vector_store %arg6[%c0_6, %c0_7], %7 {strides = array<i32>} : memref<16x32xf32, #tpu.memory_space<vmem>>, vector<16x32xf32>,
    %c0_i32_8 = arith.constant 0 : i32
    %9 = arith.cmpi eq, %arg2, %c0_i32_8 : i32
    %10 = arith.extui %9 : i1 to i32
    %c0_i32_9 = arith.constant 0 : i32
    %11 = arith.cmpi ne, %10, %c0_i32_9 : i32
    scf.if %11 {
      %c0_10 = arith.constant 0 : index
      %c0_11 = arith.constant 0 : index
      %12 = vector.load %arg6[%c0_10, %c0_11] : memref<16x32xf32, #tpu.memory_space<vmem>>, vector<16x32xf32>
      %c0_12 = arith.constant 0 : index
      %c0_13 = arith.constant 0 : index
      %13 = vector.load %arg5[%c0_12, %c0_13] : memref<16x32xf32, #tpu.memory_space<vmem>>, vector<16x32xf32>
      tpu.vector_store %arg5[%c0_12, %c0_13], %12 {strides = array<i32>} : memref<16x32xf32, #tpu.memory_space<vmem>>, vector<16x32xf32>,
    } else {
    }
    return
  }
  func.func @transform_0(%arg0: i32, %arg1: i32, %arg2: i32) -> (i32, i32) {
    %c0_i32 = arith.constant 0 : i32
    return %arg0, %arg2 : i32, i32
  }
  func.func @transform_1(%arg0: i32, %arg1: i32, %arg2: i32) -> (i32, i32) {
    %c0_i32 = arith.constant 0 : i32
    return %arg2, %arg1 : i32, i32
  }
  func.func @transform_2(%arg0: i32, %arg1: i32, %arg2: i32) -> (i32, i32) {
    %c0_i32 = arith.constant 0 : i32
    return %arg0, %arg1 : i32, i32
  }
}

</mosaic_0001>

<bundles_post_ra>
// kernel: _forward.3
= control target key start
LH: loop header
LB: loop body
LE: loop exit
PB: predicated region body
PF: predicated region fallthrough
CT: control target
= control target key end

     0   :  { %7 = vsyncpa [#allocation4], 0  ;;  %s329_s0 = inlined_call_operand.hbm [shape: bf16[16,32], index: 0, kind: input, shape index: {}]   ;;  %s330_s1 = inlined_call_operand.hbm [shape: bf16[32,64], index: 1, kind: input, shape index: {}]   ;;  %s331_s2 = inlined_call_operand.hbm [shape: bf16[16,64], index: 2, kind: output, shape index: {}]  }
   0x1   :  { %8 = vsyncpa [#allocation7], 0 }
   0x2   :  { %9 = vsyncpa [#allocation5], 0  ;;  %s258_s9 = smov [#allocation3]   ;;  %s186_s13 = scalar_lea.hbm %s329_s0, 128 }
   0x3   :  { %s15_s10 = sshll.u32 %s258_s9, 4  ;;  %p187_p0 = scmp.ne.s32.totalorder %s329_s0, %s186_s13  ;;  %s16_s10 = int_to_ptr.vmem [resolvable:$true] %s15_s10 }
   0x4   :  { %p190_p1 = scmp.lt.u32.totalorder %s186_s13, %s329_s0 }
   0x6   :  { %p192_p2 = pnand %p190_p1, %p187_p0 }
   0x8   :  { %195 = shalt.err (!%p192_p2)
}
   0x9   :  { %s196_s18 = scalar_lea.vmem %s16_s10, 128  ;;  %p201_p4 = scmp.lt.s32.totalorder %s16_s10, %s16_s10 }
   0xa   :  { %p197_p3 = scmp.ne.s32.totalorder %s16_s10, %s196_s18  ;;  %p202_p5 = scmp.lt.s32.totalorder %s196_s18, %s196_s18 }
   0xc   :  { %p203_p6 = por %p202_p5, %p201_p4 }
   0xe   :  { %p204_p7 = pnand %p203_p6, %p197_p3 }
  0x10   :  { %207 = shalt.err (!%p204_p7)
}
  0x11   :  { %s259_s19 = smov 64   ;;  %s260_s20 = smov 4  }
  0x12   :  { %21 = dma.hbm_to_vmem [thread:$0]  %s329_s0, 128, %s16_s10, [#allocation4], %s259_s19, %s259_s19, %s260_s20  }
  0x13   :  { %s261_s23 = smov [#allocation6]   ;;  %s208_s27 = scalar_lea.hbm %s330_s1, 256 }
  0x14   :  { %s27_s24 = sshll.u32 %s261_s23, 4  ;;  %p209_p8 = scmp.ne.s32.totalorder %s330_s1, %s208_s27  ;;  %s28_s24 = int_to_ptr.vmem [resolvable:$true] %s27_s24 }
  0x15   :  { %p212_p9 = scmp.lt.u32.totalorder %s208_s27, %s330_s1 }
  0x17   :  { %p214_p10 = pnand %p212_p9, %p209_p8 }
  0x19   :  { %217 = shalt.err (!%p214_p10)
}
  0x1a   :  { %s218_s4 = scalar_lea.vmem %s28_s24, 256  ;;  %p223_p12 = scmp.lt.s32.totalorder %s28_s24, %s28_s24 }
  0x1b   :  { %p219_p11 = scmp.ne.s32.totalorder %s28_s24, %s218_s4  ;;  %p224_p13 = scmp.lt.s32.totalorder %s218_s4, %s218_s4 }
  0x1d   :  { %p225_p0 = por %p224_p13, %p223_p12 }
  0x1f   :  { %p226_p1 = pnand %p225_p0, %p219_p11 }
  0x21   :  { %229 = shalt.err (!%p226_p1)
}
  0x22   :  { %33 = dma.hbm_to_vmem [thread:$0]  %s330_s1, 256, %s28_s24, [#allocation7], %s259_s19, %s259_s19, %s260_s20  }
  0x23   :  { %252 = dma.done.wait [#allocation4], 128  }
  0x24   :  { %253 = vsyncadd [#allocation4], 4294967168 }
  0x25   :  { %254 = dma.done.wait [#allocation7], 256  }
  0x26   :  { %255 = vsyncadd [#allocation7], 4294967040  ;;  %vm45_vm0 = vcmask 523264   ;;  %v262_v0 = vmov 0.0   ;;  %vm263_vm1 = vmmov 0   ;;  %v183_v1 = vld [vmem:[#allocation6] sm:$0xff]  }
  0x27   :  { %46 = vst.msk [vmem:[#allocation2] sm:$0xff] %vm45_vm0, %v262_v0  ;;  %47 = vst.msk [vmem:[#allocation2 + $0x8] sm:$0xff] %vm45_vm0, %v262_v0  ;;  %168 = vmatprep.subr.bf16.mxu0 %v262_v0  ;;  %172 = vmatprep.mubr.msk.bf16.mxu0 %vm263_vm1, %v262_v0  ;;  %v184_v2 = vld [vmem:[#allocation6 + $0x8] sm:$0xff]   ;;  %v185_v3 = vld [vmem:[#allocation3] sm:$0xff]   ;;  %vm73_vm2 = vcmask 261120   ;;  %vm136_vm3 = vcmask 519168  }
  0x28   :  { %169 = vmatpush3.bf16.msra.mxu0 %v183_v1  ;;  %s264_s1 = smov [#allocation8]  }
  0x29   :  { %170 = vmatprep.subr.bf16.mxu0 %v262_v0  ;;  %s144_s6 = sshll.u32 %s264_s1, 4  ;;  %s145_s6 = int_to_ptr.vmem [resolvable:$true] %s144_s6 }
  0x2a   :  { %s230_s7 = scalar_lea.vmem %s145_s6, 128  ;;  %p235_p3 = scmp.lt.s32.totalorder %s145_s6, %s145_s6 }
  0x2b   :  { %p231_p2 = scmp.ne.s32.totalorder %s145_s6, %s230_s7  ;;  %p236_p4 = scmp.lt.s32.totalorder %s230_s7, %s230_s7 }
  0x2c   :  { %171 = vmatpush3.bf16.msra.mxu0 %v184_v2 }
  0x2d   :  { %p237_p5 = por %p236_p4, %p235_p3 }
  0x2e   :  { %v48_v4 = vld [vmem:[#allocation2] sm:$0xff]  ;;  %v49_v6 = vld [vmem:[#allocation2 + $0x8] sm:$0xff] }
  0x2f   :  { %173 = vmatmul.mubr.msk.bf16.vlgmr.msra.gmra.mrb[0].mxu0 %vm73_vm2, %v185_v3  ;;  %p238_p6 = pnand %p237_p5, %p231_p2 }
 0x102   :  { %v111_v5 = vpop.f32.mrb[0].mxu0 }
 0x103   :  { %v118_v7 = vadd.f32 %v111_v5, %v48_v4  ;;  %v174_v8 = vpop.f32.mrb[1].mxu0 }
 0x104   :  { %v114_v9 = vpop.f32.mrb[2].mxu0 }
 0x105   :  { %121 = vst.msk [vmem:[#allocation2] sm:$0xff] %vm45_vm0, %v118_v7  ;;  %v119_v10 = vadd.f32 %v114_v9, %v49_v6  ;;  %v175_v11 = vpop.f32.mrb[3].mxu0 }
 0x107   :  { %122 = vst.msk [vmem:[#allocation2 + $0x8] sm:$0xff] %vm45_vm0, %v119_v10 }
 0x10c   :  { %v126_v12 = vld [vmem:[#allocation2] sm:$0xff] }
 0x10d   :  { %v163_v13 = vpack.c.bf16 %v126_v12, %v126_v12 }
 0x10e   :  { %v127_v14 = vld [vmem:[#allocation2 + $0x8] sm:$0xff] }
 0x10f   :  { %v164_v15 = vpack.c.bf16 %v127_v14, %v127_v14  ;;  %137 = vst.msk [vmem:[#allocation8] sm:$0xf] %vm136_vm3, %v163_v13 }
 0x111   :  { %138 = vst.msk [vmem:[#allocation8 + $0x4] sm:$0xf] %vm136_vm3, %v164_v15 }
 0x112   :  { %241 = shalt.err (!%p238_p6)
}
 0x113   :  { %s242_s10 = scalar_lea.hbm %s331_s2, 128 }
 0x114   :  { %p243_p7 = scmp.ne.s32.totalorder %s331_s2, %s242_s10  ;;  %p246_p8 = scmp.lt.u32.totalorder %s242_s10, %s331_s2 }
 0x116   :  { %p248_p9 = pnand %p246_p8, %p243_p7 }
 0x118   :  { %251 = shalt.err (!%p248_p9)
}
 0x119   :  { %150 = dma.vmem_to_hbm [thread:$0]  %s145_s6, 128, %s331_s2, [#allocation5], %s259_s19, %s259_s19, %s260_s20  }
 0x11a   :  { %256 = dma.done.wait [#allocation5], 128  }
 0x11b   :  { %257 = vsyncadd [#allocation5], 4294967168 }
 0x11c   :  { %154 = vsyncpa [#allocation4], 1 }
 0x11d   :  { %155 = vsyncpa [#allocation7], 1 }
 0x11e   :  { %156 = vsyncpa [#allocation5], 1 }

// kernel: _forward.5
= control target key start
LH: loop header
LB: loop body
LE: loop exit
PB: predicated region body
PF: predicated region fallthrough
CT: control target
= control target key end

     0   :  { %7 = vsyncpa [#allocation4], 0  ;;  %s313_s0 = inlined_call_operand.hbm [shape: bf16[16,32], index: 0, kind: input, shape index: {}]   ;;  %s314_s1 = inlined_call_operand.hbm [shape: bf16[32,32], index: 1, kind: input, shape index: {}]   ;;  %s315_s2 = inlined_call_operand.hbm [shape: f32[16,32], index: 2, kind: output, shape index: {}]  }
   0x1   :  { %8 = vsyncpa [#allocation7], 0 }
   0x2   :  { %9 = vsyncpa [#allocation5], 0  ;;  %s246_s9 = smov [#allocation3]   ;;  %s174_s13 = scalar_lea.hbm %s313_s0, 128 }
   0x3   :  { %s15_s10 = sshll.u32 %s246_s9, 4  ;;  %p175_p0 = scmp.ne.s32.totalorder %s313_s0, %s174_s13  ;;  %s16_s10 = int_to_ptr.vmem [resolvable:$true] %s15_s10 }
   0x4   :  { %p178_p1 = scmp.lt.u32.totalorder %s174_s13, %s313_s0 }
   0x6   :  { %p180_p2 = pnand %p178_p1, %p175_p0 }
   0x8   :  { %183 = shalt.err (!%p180_p2)
}
   0x9   :  { %s184_s18 = scalar_lea.vmem %s16_s10, 128  ;;  %p189_p4 = scmp.lt.s32.totalorder %s16_s10, %s16_s10 }
   0xa   :  { %p185_p3 = scmp.ne.s32.totalorder %s16_s10, %s184_s18  ;;  %p190_p5 = scmp.lt.s32.totalorder %s184_s18, %s184_s18 }
   0xc   :  { %p191_p6 = por %p190_p5, %p189_p4 }
   0xe   :  { %p192_p7 = pnand %p191_p6, %p185_p3 }
  0x10   :  { %195 = shalt.err (!%p192_p7)
}
  0x11   :  { %s247_s19 = smov 64   ;;  %s248_s20 = smov 4  }
  0x12   :  { %21 = dma.hbm_to_vmem [thread:$0]  %s313_s0, 128, %s16_s10, [#allocation4], %s247_s19, %s247_s19, %s248_s20  }
  0x13   :  { %s249_s23 = smov [#allocation6]   ;;  %s196_s27 = scalar_lea.hbm %s314_s1, 256 }
  0x14   :  { %s27_s24 = sshll.u32 %s249_s23, 4  ;;  %p197_p8 = scmp.ne.s32.totalorder %s314_s1, %s196_s27  ;;  %s28_s24 = int_to_ptr.vmem [resolvable:$true] %s27_s24 }
  0x15   :  { %p200_p9 = scmp.lt.u32.totalorder %s196_s27, %s314_s1 }
  0x17   :  { %p202_p10 = pnand %p200_p9, %p197_p8 }
  0x19   :  { %205 = shalt.err (!%p202_p10)
}
  0x1a   :  { %s206_s4 = scalar_lea.vmem %s28_s24, 256  ;;  %p211_p12 = scmp.lt.s32.totalorder %s28_s24, %s28_s24 }
  0x1b   :  { %p207_p11 = scmp.ne.s32.totalorder %s28_s24, %s206_s4  ;;  %p212_p13 = scmp.lt.s32.totalorder %s206_s4, %s206_s4 }
  0x1d   :  { %p213_p0 = por %p212_p13, %p211_p12 }
  0x1f   :  { %p214_p1 = pnand %p213_p0, %p207_p11 }
  0x21   :  { %217 = shalt.err (!%p214_p1)
}
  0x22   :  { %33 = dma.hbm_to_vmem [thread:$0]  %s314_s1, 256, %s28_s24, [#allocation7], %s247_s19, %s247_s19, %s248_s20  }
  0x23   :  { %240 = dma.done.wait [#allocation4], 128  }
  0x24   :  { %241 = vsyncadd [#allocation4], 4294967168 }
  0x25   :  { %242 = dma.done.wait [#allocation7], 256  }
  0x26   :  { %243 = vsyncadd [#allocation7], 4294967040  ;;  %vm45_vm0 = vcmask 261120   ;;  %v250_v0 = vmov 0.0   ;;  %vm251_vm1 = vmmov 0   ;;  %v171_v1 = vld [vmem:[#allocation6] sm:$0xff]  }
  0x27   :  { %154 = vmatprep.subr.bf16.mxu0 %v250_v0  ;;  %158 = vmatprep.mubr.msk.bf16.mxu0 %vm251_vm1, %v250_v0  ;;  %46 = vst.msk [vmem:[#allocation2] sm:$0xff] %vm45_vm0, %v250_v0  ;;  %47 = vst.msk [vmem:[#allocation2 + $0x8] sm:$0xff] %vm45_vm0, %v250_v0  ;;  %v172_v2 = vld [vmem:[#allocation6 + $0x8] sm:$0xff]   ;;  %v173_v3 = vld [vmem:[#allocation3] sm:$0xff]   ;;  %s252_s1 = smov [#allocation8]  }
  0x28   :  { %155 = vmatpush3.bf16.msra.mxu0 %v171_v1  ;;  %s134_s6 = sshll.u32 %s252_s1, 4  ;;  %s135_s6 = int_to_ptr.vmem [resolvable:$true] %s134_s6 }
  0x29   :  { %156 = vmatprep.subr.bf16.mxu0 %v250_v0  ;;  %s218_s7 = scalar_lea.vmem %s135_s6, 256  ;;  %p223_p3 = scmp.lt.s32.totalorder %s135_s6, %s135_s6 }
  0x2a   :  { %p219_p2 = scmp.ne.s32.totalorder %s135_s6, %s218_s7  ;;  %p224_p4 = scmp.lt.s32.totalorder %s218_s7, %s218_s7 }
  0x2c   :  { %157 = vmatpush3.bf16.msra.mxu0 %v172_v2  ;;  %p225_p5 = por %p224_p4, %p223_p3 }
  0x2e   :  { %v48_v4 = vld [vmem:[#allocation2] sm:$0xff]  ;;  %v49_v6 = vld [vmem:[#allocation2 + $0x8] sm:$0xff]  ;;  %p226_p6 = pnand %p225_p5, %p219_p2 }
  0x2f   :  { %159 = vmatmul.mubr.msk.bf16.vlgmr.msra.gmra.mrb[0].mxu0 %vm45_vm0, %v173_v3 }
 0x102   :  { %v111_v5 = vpop.f32.mrb[0].mxu0 }
 0x103   :  { %v118_v7 = vadd.f32 %v111_v5, %v48_v4  ;;  %v160_v8 = vpop.f32.mrb[1].mxu0 }
 0x104   :  { %v114_v9 = vpop.f32.mrb[2].mxu0 }
 0x105   :  { %120 = vst.msk [vmem:[#allocation2] sm:$0xff] %vm45_vm0, %v118_v7  ;;  %v119_v10 = vadd.f32 %v114_v9, %v49_v6  ;;  %v161_v11 = vpop.f32.mrb[3].mxu0 }
 0x107   :  { %121 = vst.msk [vmem:[#allocation2 + $0x8] sm:$0xff] %vm45_vm0, %v119_v10 }
 0x10c   :  { %v125_v12 = vld [vmem:[#allocation2] sm:$0xff] }
 0x10d   :  { %127 = vst.msk [vmem:[#allocation8] sm:$0xff] %vm45_vm0, %v125_v12 }
 0x10e   :  { %v126_v13 = vld [vmem:[#allocation2 + $0x8] sm:$0xff] }
 0x10f   :  { %128 = vst.msk [vmem:[#allocation8 + $0x8] sm:$0xff] %vm45_vm0, %v126_v13 }
 0x110   :  { %229 = shalt.err (!%p226_p6)
}
 0x111   :  { %s230_s10 = scalar_lea.hbm %s315_s2, 256 }
 0x112   :  { %p231_p7 = scmp.ne.s32.totalorder %s315_s2, %s230_s10  ;;  %p234_p8 = scmp.lt.u32.totalorder %s230_s10, %s315_s2 }
 0x114   :  { %p236_p9 = pnand %p234_p8, %p231_p7 }
 0x116   :  { %239 = shalt.err (!%p236_p9)
}
 0x117   :  { %s253_s15 = smov 128   ;;  %s254_s16 = smov 8  }
 0x118   :  { %140 = dma.vmem_to_hbm [thread:$0]  %s135_s6, 256, %s315_s2, [#allocation5], %s253_s15, %s253_s15, %s254_s16  }
 0x119   :  { %244 = dma.done.wait [#allocation5], 256  }
 0x11a   :  { %245 = vsyncadd [#allocation5], 4294967040 }
 0x11b   :  { %144 = vsyncpa [#allocation4], 1 }
 0x11c   :  { %145 = vsyncpa [#allocation7], 1 }
 0x11d   :  { %146 = vsyncpa [#allocation5], 1 }

// kernel: _forward.4
= control target key start
LH: loop header
LB: loop body
LE: loop exit
PB: predicated region body
PF: predicated region fallthrough
CT: control target
= control target key end

     0   :  { %s1629_s0 = inlined_call_operand.hbm [shape: bf16[2,2,32,8], index: 0, kind: input, shape index: {}]   ;;  %s1630_s1 = inlined_call_operand.hbm [shape: bf16[2,2,16,8], index: 1, kind: input, shape index: {}]   ;;  %s1631_s2 = inlined_call_operand.hbm [shape: bf16[2,2,16,8], index: 2, kind: input, shape index: {}]   ;;  %s1632_s3 = inlined_call_operand.hbm [shape: bf16[2,2,32,8], index: 3, kind: output, shape index: {}]  }
   0x1   :  { %1646 = sst [smem:[#allocation21_spill]] %s1630_s1 }
   0x2   :  { %8 = vsyncpa [#allocation6], 0 }
   0x3   :  { %10 = vsyncpa [#allocation6 + $0x1], 0 }
   0x4   :  { %11 = vsyncpa [#allocation9], 0 }
   0x5   :  { %13 = vsyncpa [#allocation9 + $0x1], 0 }
   0x6   :  { %14 = vsyncpa [#allocation7], 0 }
   0x7   :  { %16 = vsyncpa [#allocation7 + $0x1], 0  ;;  %s1275_s12 = smov 0   ;;  %s1277_s13 = smov 0  }
   0x8   :  { %s1279_s14 = smov 0   ;;  %s1281_s15 = smov 0  }
   0x9   :  { %s1283_s16 = smov 0   ;;  %s1285_s17 = smov 0  }
   0xa   :  { %s1287_s18 = smov 0   ;;  %s1289_s19 = smov 0  }
   0xb LB: > { %1647 = sst [smem:[#allocation15_spill]] %s1214_s12  ;;  %s1316_s20 = sadd.s32 4294967295, %s1242_s19   ;;  %s1242_s19 = sphi %s1289_s19, %s22_s19   ;;  %s1238_s18 = sphi %s1287_s18, %s1680_s18   ;;  %s1234_s17 = sphi %s1285_s17, %s1679_s17   ;;  %s1230_s16 = sphi %s1283_s16, %s1678_s16   ;;  %s1226_s15 = sphi %s1281_s15, %s1677_s15   ;;  %s1222_s14 = sphi %s1279_s14, %s1672_s14   ;;  %s1218_s13 = sphi %s1277_s13, %s1676_s13   ;;  %s1214_s12 = sphi %s1275_s12, %s1675_s12  }
   0xc   : > { %1648 = sst [smem:[#allocation16_spill]] %s1222_s14  ;;  %s864_s21 = sadd.s32 4294967294, %s1242_s19  }
   0xd   : > { %s44_s22 = sadd.s32 1, %s1234_s17  ;;  %s48_s23 = sadd.s32 1, %s1238_s18 }
   0xe   : > { %p46_p0 = scmp.ge.s32.totalorder %s44_s22, 2  ;;  %s59_s24 = sadd.s32 1, %s1222_s14 }
   0xf   : > { %p66_p1 = scmp.ne.s32.totalorder %s1222_s14, %s1218_s13  ;;  %p67_p2 = scmp.eq.s32.totalorder %s1242_s19, 0 }
  0x10   : > { %s1682_s22 = smov (%p46_p0, %s44_s22), 0  ;;  %s1684_s23 = smov (!%p46_p0, %s48_s23), %s1238_s18 }
  0x11   : > { %1649 = sst [smem:[#allocation17_spill]] %s1682_s22  ;;  %s53_s25 = ssub.s32 %s1234_s17, %s1682_s22 }
  0x12   : > { %p1330_p3 = por %p67_p2, %p66_p1  ;;  %p50_p4 = scmp.ge.s32.totalorder %s1684_s23, 2 }
  0x13   : > { %p72_p5 = scmp.ne.s32.totalorder %s1218_s13, %s1214_s12  ;;  %p73_p6 = scmp.eq.s32.totalorder %s1316_s20, 0 }
  0x14   : > { %p160_p7 = scmp.eq.s32.totalorder %s1316_s20, 3  ;;  %s1686_s23 = smov (%p50_p4, %s1684_s23), 0 }
  0x15   : > { %1651 = sst [smem:[#allocation18_spill]] %s1686_s23  ;;  %p1340_p8 = por %p73_p6, %p72_p5 }
  0x16   : > { %p1344_p9 = por %p160_p7, %p66_p1  ;;  %s52_s29 = ssub.s32 %s1238_s18, %s1686_s23 }
  0x17   : > { %s1652_s27 = scalar_select %p1340_p8, 1, 0 }
  0x18   : > { %s1653_s28 = scalar_select %p1344_p9, 1, 0 }
  0x19   : > { %p166_p10 = scmp.eq.s32.totalorder %s864_s21, 3  ;;  %s54_s30 = sor.u32 %s53_s25, %s52_s29 }
  0x1a   : > { %p57_p11 = scmp.eq.s32.totalorder %s54_s30, 0  ;;  %p947_p13 = scmp.lt.s32.totalorder %s1242_s19, 4 }
  0x1b   : > { %p1350_p12 = por %p166_p10, %p72_p5  ;;  %s1356_s5 = sand.u32 1, %s1222_s14  }
  0x1c   : > { %s1359_s6 = scalar_select %p57_p11, %s1222_s14, %s59_s24  }
  0x1d   : > { %s1654_s4 = scalar_select %p1350_p12, 1, 0 }
  0x1e   : > { %1656 = sst [smem:[#allocation20_spill]] %s1359_s6  ;;  %p1363_p0 = pnand %p947_p13, %p1330_p3 }
  0x1f   : > { %1655 = sst [smem:[#allocation19_spill]] %s1654_s4  ;;  %s211_s8 = sand.u32 1, %s1242_s19  }
  0x20   : > { %s1634_s9 = sshll.u32 %s1356_s5, 3  ;;  %s872_s10 = sshll.u32 %s1234_s17, 1 }
  0x21   : > { %s873_s11 = sshll.u32 %s1238_s18, 2  ;;  %s215_s25 = scalar_lea.vmem [#allocation8], %s1634_s9 }
  0x22   : > { %s1371_s21 = sadd.s32 %s873_s11, %s872_s10  ;;  %s226_s29 = sshll.u32 %s215_s25, 4  ;;  %s1376_s29 = int_to_ptr.vmem [resolvable:$true] %s226_s29 }
  0x23   : > { %s1635_s30 = sshll.u32 %s1371_s21, 6  ;;  %s1658_s1 = sld [smem:[#allocation21_spill]] }
  0x24   : > { %s1385_s10 = scalar_lea.sflag [#allocation9], %s211_s8  ;;  %p1391_p2 = pneg %p1363_p0 }
  0x29   : > { %s1383_s23 = scalar_lea.hbm %s1658_s1, %s1635_s30  ;;  %s1055_s9 = scalar_lea.hbm %s1658_s1, 512 }
  0x2a   : > { %s1050_s11 = scalar_lea.hbm %s1383_s23, 128  ;;  %p1056_p5 = scmp.lt.u32.totalorder %s1383_s23, %s1658_s1 }
  0x2b   : > { %p1051_p1 = scmp.ne.s32.totalorder %s1383_s23, %s1050_s11  ;;  %p1057_p6 = scmp.lt.u32.totalorder %s1055_s9, %s1050_s11 }
  0x2c   : > { %p1059_p10 = scmp.lt.u32.totalorder %s1050_s11, %s1383_s23 }
  0x2d   : > { %p1053_p3 = pnand %p1391_p2, %p1051_p1  ;;  %p1058_p7 = por %p1057_p6, %p1056_p5 }
  0x2f   : > { %p1054_p4 = pneg %p1053_p3  ;;  %p1060_p11 = por %p1059_p10, %p1058_p7 }
  0x31   : > { %p1061_p13 = pnand %p1060_p11, %p1054_p4 }
  0x33   : > { %1064 = shalt.err (!%p1061_p13)
}
  0x34   : > { %s1065_s8 = scalar_lea.vmem %s1376_s29, 128  ;;  %s1244_s24 = smov [#allocation8]  }
  0x35   : > { %p1066_p1 = scmp.ne.s32.totalorder %s1376_s29, %s1065_s8  ;;  %s1070_s26 = sshll.u32 %s1244_s24, 4  ;;  %s1071_s26 = int_to_ptr.vmem [resolvable:$false] %s1070_s26 }
  0x36   : > { %s1072_s22 = scalar_lea.vmem %s1071_s26, 256  ;;  %p1073_p9 = scmp.lt.s32.totalorder %s1376_s29, %s1071_s26 }
  0x37   : > { %p1068_p3 = pnand %p1066_p1, %p1391_p2  ;;  %p1074_p8 = scmp.lt.s32.totalorder %s1072_s22, %s1065_s8 }
  0x39   : > { %p1069_p12 = pneg %p1068_p3  ;;  %p1075_p5 = por %p1074_p8, %p1073_p9 }
  0x3b   : > { %p1076_p6 = pnand %p1075_p5, %p1069_p12 }
  0x3d   : > { %1079 = shalt.err (!%p1076_p6)
}
  0x3e   : > { %s1642_s9 = smov 64   ;;  %s1644_s30 = smov 4  }
  0x3f   : > { %939 = dma.hbm_to_vmem [thread:$0]  (!%p1363_p0), %s1383_s23, 128, %s1376_s29, %s1385_s10, %s1642_s9, %s1642_s9, %s1644_s30  }
  0x40   : > { %s1660_s11 = sshll.u32 %s1371_s21, 6  ;;  %s1661_s22 = sshll.u32 %s1356_s5, 3 }
  0x41   : > { %s1423_s26 = scalar_lea.hbm %s1631_s2, %s1660_s11  ;;  %s240_s1 = scalar_lea.vmem [#allocation10], %s1661_s22 }
  0x42   : > { %s251_s6 = sshll.u32 %s240_s1, 4  ;;  %p879_p8 = scmp.ge.s32.totalorder %s1242_s19, 1  ;;  %s1438_s6 = int_to_ptr.vmem [resolvable:$true] %s251_s6 }
  0x43   : > { %p259_p9 = scmp.lt.s32.totalorder %s1242_s19, 5  ;;  %s867_s4 = sshll.u32 %s1356_s5, 4 }
  0x44   : > { %s868_s12 = sshll.u32 %s1234_s17, 2  ;;  %s869_s23 = sshll.u32 %s1238_s18, 3 }
  0x45   : > { %p1429_p12 = pnand %p879_p8, %p259_p9  ;;  %s190_s21 = scalar_lea.vmem [#allocation5], %s867_s4 }
  0x46   : > { %s201_s29 = sshll.u32 %s190_s21, 4  ;;  %s198_s9 = sadd.s32 %s869_s23, %s868_s12  ;;  %s1436_s29 = int_to_ptr.vmem [resolvable:$true] %s201_s29 }
  0x47   : > { %s1662_s14 = scalar_select %p1429_p12, 1, 0 }
  0x48   : > { %s870_s11 = sshll.u32 %s198_s9, 6  ;;  %s187_s22 = scalar_lea.sflag [#allocation6], %s1356_s5 }
  0x49   : > { %s1443_s24 = scalar_lea.hbm %s1629_s0, %s870_s11  ;;  %s1085_s23 = scalar_lea.hbm %s1629_s0, 1024 }
  0x4a   : > { %s1080_s30 = scalar_lea.hbm %s1443_s24, 256  ;;  %p1086_p11 = scmp.lt.u32.totalorder %s1443_s24, %s1629_s0 }
  0x4b   : > { %p1081_p4 = scmp.ne.s32.totalorder %s1443_s24, %s1080_s30  ;;  %p1087_p13 = scmp.lt.u32.totalorder %s1085_s23, %s1080_s30 }
  0x4c   : > { %p1089_p3 = scmp.lt.u32.totalorder %s1080_s30, %s1443_s24 }
  0x4d   : > { %p1083_p7 = pnand %p1081_p4, %p1391_p2  ;;  %p1088_p1 = por %p1087_p13, %p1086_p11 }
  0x4f   : > { %p1084_p10 = pneg %p1083_p7  ;;  %p1090_p5 = por %p1089_p3, %p1088_p1 }
  0x51   : > { %p1091_p6 = pnand %p1090_p5, %p1084_p10 }
  0x53   : > { %1094 = shalt.err (!%p1091_p6)
}
  0x54   : > { %s1095_s11 = scalar_lea.vmem %s1436_s29, 256  ;;  %s1247_s8 = smov [#allocation5]  }
  0x55   : > { %p1096_p8 = scmp.ne.s32.totalorder %s1436_s29, %s1095_s11  ;;  %s1100_s1 = sshll.u32 %s1247_s8, 4  ;;  %s1101_s1 = int_to_ptr.vmem [resolvable:$false] %s1100_s1 }
  0x56   : > { %s1102_s12 = scalar_lea.vmem %s1101_s1, 512  ;;  %p1103_p7 = scmp.lt.s32.totalorder %s1436_s29, %s1101_s1 }
  0x57   : > { %p1098_p9 = pnand %p1096_p8, %p1391_p2  ;;  %p1104_p12 = scmp.lt.s32.totalorder %s1102_s12, %s1095_s11 }
  0x59   : > { %p1099_p4 = pneg %p1098_p9  ;;  %p1105_p11 = por %p1104_p12, %p1103_p7 }
  0x5b   : > { %p1106_p13 = pnand %p1105_p11, %p1099_p4 }
  0x5d   : > { %1109 = shalt.err (!%p1106_p13)
}
  0x5e   : > { %s1663_s30 = smov 4   ;;  %s1664_s4 = smov 64  }
  0x5f   : > { %936 = dma.hbm_to_vmem [thread:$0]  (!%p1363_p0), %s1443_s24, 256, %s1436_s29, %s187_s22, %s1664_s4, %s1664_s4, %s1663_s30  }
  0x60   : > { %s1110_s23 = scalar_lea.hbm %s1423_s26, 128  ;;  %s1115_s11 = scalar_lea.hbm %s1631_s2, 512 }
  0x61   : > { %p1111_p10 = scmp.ne.s32.totalorder %s1423_s26, %s1110_s23  ;;  %p1116_p3 = scmp.lt.u32.totalorder %s1423_s26, %s1631_s2 }
  0x62   : > { %p1117_p5 = scmp.lt.u32.totalorder %s1115_s11, %s1110_s23  ;;  %p1119_p8 = scmp.lt.u32.totalorder %s1110_s23, %s1423_s26 }
  0x63   : > { %p1113_p12 = pnand %p1111_p10, %p1391_p2 }
  0x64   : > { %p1118_p6 = por %p1117_p5, %p1116_p3 }
  0x65   : > { %p1114_p1 = pneg %p1113_p12 }
  0x66   : > { %p1120_p9 = por %p1119_p8, %p1118_p6 }
  0x68   : > { %p1121_p4 = pnand %p1120_p9, %p1114_p1 }
  0x6a   : > { %1124 = shalt.err (!%p1121_p4)
}
  0x6b   : > { %s1125_s5 = scalar_lea.vmem %s1438_s6, 128  ;;  %s1248_s29 = smov [#allocation10]  }
  0x6c   : > { %p1126_p7 = scmp.ne.s32.totalorder %s1438_s6, %s1125_s5  ;;  %s1130_s24 = sshll.u32 %s1248_s29, 4  ;;  %s1131_s24 = int_to_ptr.vmem [resolvable:$false] %s1130_s24 }
  0x6d   : > { %s1132_s22 = scalar_lea.vmem %s1131_s24, 256  ;;  %p1133_p10 = scmp.lt.s32.totalorder %s1438_s6, %s1131_s24 }
  0x6e   : > { %p1128_p11 = pnand %p1126_p7, %p1391_p2  ;;  %p1134_p12 = scmp.lt.s32.totalorder %s1132_s22, %s1125_s5 }
  0x70   : > { %p1129_p13 = pneg %p1128_p11  ;;  %p1135_p3 = por %p1134_p12, %p1133_p10 }
  0x72   : > { %p1136_p5 = pnand %p1135_p3, %p1129_p13 }
  0x74   : > { %1139 = shalt.err (!%p1136_p5)
}
  0x75   : > { %942 = dma.hbm_to_vmem [thread:$0]  (!%p1363_p0), %s1423_s26, 128, %s1438_s6, %s1385_s10, %s1664_s4, %s1664_s4, %s1663_s30  }
  0x76   : > { %p1665_p2 = scmp.ne.s32.totalorder %s1662_s14, 0 }
  0x77   : > { %s1500_s25 = sand.u32 (!%p1665_p2), 1, %s1218_s13   ;;  %p1666_p1 = scmp.ne.s32.totalorder (!%p1665_p2), %s1652_s27, 0 }
  0x78   : > { %263 = sbr.rel (%p1665_p2) target bundleno = 961 (0x3c1), region = 32  ;;  %s880_s12 = sshll.u32 (!%p1665_p2), %s1500_s25, 4 }
  0x79   : > { %s266_s23 = scalar_lea.sflag (!%p1665_p2), [#allocation6], %s1500_s25  ;;  %s269_s7 = scalar_lea.vmem (!%p1665_p2), [#allocation5], %s880_s12 }
  0x7f   : > { %1201 = dma.done.wait (%p1666_p1), %s266_s23, 256  }
  0x80   : > { %1203 = vsyncadd (%p1666_p1), %s266_s23, 4294967040  ;;  %s274_s14 = sand.u32 1, %s1316_s20   ;;  %s881_s6 = sshll.u32 %s1500_s25, 3 }
  0x81   : > { %s275_s10 = scalar_lea.sflag [#allocation9], %s274_s14  ;;  %s278_s26 = scalar_lea.vmem [#allocation8], %s881_s6 }
  0x82   : > { %1205 = dma.done.wait (%p1666_p1), %s275_s10, 256  }
  0x83   : > { %1207 = vsyncadd (%p1666_p1), %s275_s10, 4294967040  ;;  %vm338_vm0 = vcmask 64512   ;;  %v1022_v0 = vld [vmem:[%s278_s26] sm:$0xff]   ;;  %v1024_v3 = vld [vmem:[%s269_s7 + $0x8] sm:$0xff]   ;;  %vm329_vm1 = vcmask 7168   ;;  %v426_v5 = vlaneseq  ;;  %vm439_vm3 = vcmask 130048  }
  0x84   : > { %v1023_v1 = vld [vmem:[%s269_s7] sm:$0xff]   ;;  %924 = vmatprep.subr.msk.bf16.mxu0 %vm338_vm0, %v1022_v0  ;;  %v374_v2 = vsel %vm338_vm0, %v1022_v0, 0  ;;  %v1249_v4 = vmov -1e+30   ;;  %v1250_v19 = vmov 0   ;;  %v1251_v20 = vmov 0.0  }
  0x85   : > { %913 = vmatpush3.bf16.xpose.msra.mxu0 %v374_v2  ;;  %914 = vmatprep.mubr.msk.bf16.mxu0 %vm338_vm0, %v1023_v1  ;;  %332 = vst.msk [vmem:[#allocation2 + $0x10] sm:$0xff] %vm329_vm1, %v1249_v4  ;;  %330 = vst.msk [vmem:[#allocation2] sm:$0xff] %vm329_vm1, %v1249_v4  ;;  %v427_v6 = vand.u32 127, %v426_v5  ;;  %s287_s20 = scalar_lea.vmem [#allocation10], %s881_s6  ;;  %s897_s27 = sshll.u32 %s1226_s15, 2  ;;  %vm687_vm4 = vcmask 60416  }
  0x86   : > { %331 = vst.msk [vmem:[#allocation2 + $0x8] sm:$0xff] %vm329_vm1, %v1249_v4  ;;  %333 = vst.msk [vmem:[#allocation2 + $0x18] sm:$0xff] %vm329_vm1, %v1249_v4  ;;  %1021 = vset.pattern.permute.xlu1 %v1250_v19  ;;  %1020 = vset.pattern.permute.xlu0 %v1250_v19  ;;  %v1025_v37 = vld [vmem:[%s287_s20] sm:$0xff]   ;;  %s898_s30 = sshll.u32 %s1230_s16, 3  ;;  %s319_s9 = scalar_lea.vmem [#allocation11], %s880_s12 }
  0x87   : > { %vm430_vm2 = vcmp.lt.s32.totalorder %v427_v6, 12  ;;  %334 = vst.msk [vmem:[#allocation3] sm:$0xff] %vm329_vm1, %v1251_v20  ;;  %335 = vst.msk [vmem:[#allocation3 + $0x8] sm:$0xff] %vm329_vm1, %v1251_v20  ;;  %918 = vmatprep.subr.bf16.mxu1 %v1025_v37  ;;  %s707_s4 = sadd.s32 %s898_s30, %s897_s27  ;;  %s710_s21 = sshll.u32 %s319_s9, 4  ;;  %s1567_s21 = int_to_ptr.vmem [resolvable:$true] %s710_s21 }
  0x88   : > { %336 = vst.msk [vmem:[#allocation3 + $0x10] sm:$0xff] %vm329_vm1, %v1251_v20  ;;  %337 = vst.msk [vmem:[#allocation3 + $0x18] sm:$0xff] %vm329_vm1, %v1251_v20  ;;  %919 = vmatpush3.bf16.msra.mxu1 %v1025_v37  ;;  %s899_s11 = sshll.u32 %s707_s4, 6  ;;  %s693_s1 = scalar_lea.sflag [#allocation7], %s1500_s25 }
  0x89   : > { %339 = vst.msk [vmem:[#allocation4] sm:$0xff] %vm338_vm0, %v1251_v20  ;;  %340 = vst.msk [vmem:[#allocation4 + $0x8] sm:$0xff] %vm338_vm0, %v1251_v20  ;;  %s1574_s8 = scalar_lea.hbm %s1632_s3, %s899_s11  ;;  %s1140_s5 = scalar_lea.vmem %s1567_s21, 256 }
  0x8a   : > { %341 = vst.msk [vmem:[#allocation4 + $0x10] sm:$0xff] %vm338_vm0, %v1251_v20  ;;  %342 = vst.msk [vmem:[#allocation4 + $0x18] sm:$0xff] %vm338_vm0, %v1251_v20  ;;  %p1141_p0 = scmp.ne.s32.totalorder %s1567_s21, %s1140_s5  ;;  %p1667_p6 = scmp.ne.s32.totalorder %s1653_s28, 0 }
  0x8b   : > { %s1252_s29 = smov [#allocation11]  }
  0x8c   : > { %915 = vmatmul.mubr.msk.bf16.vlgmr.msra.gmra.mrb[0].mxu0 %vm338_vm0, %v1024_v3  ;;  %v437_v21 = vld [vmem:[#allocation2 + $0x10] sm:$0xff]  ;;  %v435_v22 = vld [vmem:[#allocation2] sm:$0xff]  ;;  %p1142_p8 = pnand %p1141_p0, %p1667_p6  ;;  %s1144_s24 = sshll.u32 %s1252_s29, 4  ;;  %s1145_s24 = int_to_ptr.vmem [resolvable:$false] %s1144_s24 }
  0x8d   : > { %v438_v27 = vld [vmem:[#allocation2 + $0x18] sm:$0xff]  ;;  %v436_v29 = vld [vmem:[#allocation2 + $0x8] sm:$0xff]  ;;  %s1146_s22 = scalar_lea.vmem %s1145_s24, 512  ;;  %p1147_p4 = scmp.lt.s32.totalorder %s1567_s21, %s1145_s24 }
  0x8e   : > { %v500_v4 = vld [vmem:[#allocation3] sm:$0xff]  ;;  %p1143_p9 = pneg %p1142_p8  ;;  %p1148_p7 = scmp.lt.s32.totalorder %s1146_s22, %s1140_s5 }
  0x90   : > { %p1149_p11 = por %p1148_p7, %p1147_p4 }
  0x92   : > { %p1150_p13 = pnand %p1149_p11, %p1143_p9 }
 0x15f   : > { %v916_v7 = vpop.f32.mrb[0].mxu0 }
 0x160   : > { %v433_v8 = vsel %vm430_vm2, %v916_v7, -1e+30  ;;  %v410_v9 = vpop.f32.mrb[1].mxu0  ;;  %v502_v7 = vld [vmem:[#allocation3 + $0x10] sm:$0xff] }
 0x161   : > { %v431_v10 = vsel %vm430_vm2, %v410_v9, -1e+30  ;;  %v917_v11 = vpop.f32.mrb[2].mxu0  ;;  %v446_v12 = vsel %vm439_vm3, %v433_v8, -inf }
 0x162   : > { %v1527_v13 = vsel %vm430_vm2, %v917_v11, -1e+30  ;;  %447 = vmax.xlane.f32.xlu1 %v446_v12  ;;  %v413_v14 = vpop.f32.mrb[3].mxu0  ;;  %v440_v15 = vsel %vm439_vm3, %v431_v10, -inf }
 0x163   : > { %v432_v16 = vsel %vm430_vm2, %v413_v14, -1e+30  ;;  %441 = vmax.xlane.f32.xlu0 %v440_v15  ;;  %v449_v17 = vsel %vm439_vm3, %v1527_v13, -inf  ;;  %v503_v14 = vld [vmem:[#allocation3 + $0x18] sm:$0xff] }
 0x164   : > { %v443_v18 = vsel %vm439_vm3, %v432_v16, -inf }
 0x166   : > { %450 = vmax.xlane.f32.xlu1 %v449_v17 }
 0x167   : > { %444 = vmax.xlane.f32.xlu0 %v443_v18 }
 0x1ef   : > { %v448_v23 = vpop.xlane.xlu1 %447 }
 0x1f0   : > { %v454_v24 = vmax.f32 %v437_v21, %v448_v23  ;;  %v442_v25 = vpop.xlane.xlu0 %441 }
 0x1f1   : > { %v452_v26 = vmax.f32 %v435_v22, %v442_v25 }
 0x1f2   : > { %v458_v28 = vsub.f32 %v437_v21, %v454_v24  ;;  %630 = vst.msk [vmem:[#allocation2 + $0x10] sm:$0xff] %vm329_vm1, %v454_v24  ;;  %480 = vperm.xlu1 %1021, %v454_v24  }
 0x1f3   : > { %v456_v30 = vsub.f32 %v435_v22, %v452_v26  ;;  %628 = vst.msk [vmem:[#allocation2] sm:$0xff] %vm329_vm1, %v452_v26  ;;  %v451_v31 = vpop.xlane.xlu1 %450  ;;  %470 = vperm.xlu0 %1020, %v452_v26  }
 0x1f4   : > { %v455_v32 = vmax.f32 %v438_v27, %v451_v31  ;;  %v445_v33 = vpop.xlane.xlu0 %444  ;;  %v464_v62 = vmul.f32 1.442695, %v458_v28  ;;  %v529_v31 = vld [vmem:[#allocation4] sm:$0xff] }
 0x1f5   : > { %v453_v34 = vmax.f32 %v436_v29, %v445_v33  ;;  %v460_v60 = vmul.f32 1.442695, %v456_v30  ;;  %v531_v30 = vld [vmem:[#allocation4 + $0x10] sm:$0xff] }
 0x1f6   : > { %v459_v35 = vsub.f32 %v438_v27, %v455_v32  ;;  %631 = vst.msk [vmem:[#allocation2 + $0x18] sm:$0xff] %vm329_vm1, %v455_v32 }
 0x1f7   : > { %v457_v36 = vsub.f32 %v436_v29, %v453_v34  ;;  %629 = vst.msk [vmem:[#allocation2 + $0x8] sm:$0xff] %vm329_vm1, %v453_v34  ;;  %475 = vperm.xlu1 %1021, %v453_v34   ;;  %v530_v34 = vld [vmem:[#allocation4 + $0x8] sm:$0xff] }
 0x1f8   : > { %v466_v63 = vmul.f32 1.442695, %v459_v35 }
 0x1f9   : > { %v462_v61 = vmul.f32 1.442695, %v457_v36 }
 0x1fb   : > { %485 = vperm.xlu1 %1021, %v455_v32   ;;  %v532_v32 = vld [vmem:[#allocation4 + $0x18] sm:$0xff] }
 0x271   : > { %v481_v38 = vpop.permute.xlu1 %480 }
 0x272   : > { %v490_v39 = vsub.f32 %v433_v8, %v481_v38  ;;  %v471_v40 = vpop.permute.xlu0 %470  ;;  %v501_v8 = vld [vmem:[#allocation3 + $0x8] sm:$0xff] }
 0x273   : > { %v488_v41 = vsub.f32 %v431_v10, %v471_v40 }
 0x274   : > { %v496_v42 = vmul.f32 1.442695, %v490_v39 }
 0x275   : > { %v492_v43 = vmul.f32 1.442695, %v488_v41 }
 0x276   : > { %v476_v44 = vpop.permute.xlu1 %475 }
 0x277   : > { %1026 = vpow2.f32 %v492_v43  ;;  %v489_v45 = vsub.f32 %v432_v16, %v476_v44 }
 0x278   : > { %1028 = vpow2.f32 %v496_v42 }
 0x279   : > { %v494_v46 = vmul.f32 1.442695, %v489_v45 }
 0x27a   : > { %v486_v47 = vpop.permute.xlu1 %485 }
 0x27b   : > { %1030 = vpow2.f32 %v494_v46  ;;  %v491_v48 = vsub.f32 %v1527_v13, %v486_v47 }
 0x27d   : > { %v498_v49 = vmul.f32 1.442695, %v491_v48 }
 0x27f   : > { %1032 = vpow2.f32 %v498_v49 }
 0x280   : > { %1034 = vpow2.f32 %v460_v60 }
 0x281   : > { %v1027_v50 = vpop.eup %1026  ;;  %1036 = vpow2.f32 %v462_v61 }
 0x282   : > { %v508_v51 = vsel %vm439_vm3, %v1027_v50, 0.0  ;;  %v1029_v52 = vpop.eup %1028  ;;  %1038 = vpow2.f32 %v464_v62 }
 0x283   : > { %509 = vadd.xlane.f32.xlu1 %v508_v51  ;;  %v514_v55 = vsel %vm439_vm3, %v1029_v52, 0.0  ;;  %1040 = vpow2.f32 %v466_v63 }
 0x285   : > { %v1031_v53 = vpop.eup %1030 }
 0x286   : > { %v511_v54 = vsel %vm439_vm3, %v1031_v53, 0.0  ;;  %v557_v56 = vpack.c.bf16 %v1031_v53, %v1027_v50 }
 0x287   : > { %512 = vadd.xlane.f32.xlu0 %v511_v54  ;;  %515 = vadd.xlane.f32.xlu1 %v514_v55 }
 0x288   : > { %920 = vmatprep.mubr.msk.bf16.mxu1 %vm439_vm3, %v557_v56 }
 0x289   : > { %v1033_v57 = vpop.eup %1032 }
 0x28a   : > { %v517_v58 = vsel %vm439_vm3, %v1033_v57, 0.0  ;;  %v558_v59 = vpack.c.bf16 %v1033_v57, %v1029_v52  ;;  %v1035_v0 = vpop.eup %1034 }
 0x28b   : > { %518 = vadd.xlane.f32.xlu1 %v517_v58  ;;  %v1037_v1 = vpop.eup %1036  ;;  %v504_v5 = vmul.f32 %v1035_v0, %v500_v4 }
 0x28c   : > { %921 = vmatmul.mubr.msk.bf16.vlgmr.msra.gmra.mrb[0].mxu1 %vm439_vm3, %v558_v59  ;;  %v1039_v2 = vpop.eup %1038  ;;  %v505_v11 = vmul.f32 %v1037_v1, %v501_v8 }
 0x28d   : > { %v1041_v3 = vpop.eup %1040  ;;  %v506_v10 = vmul.f32 %v1039_v2, %v502_v7 }
 0x28e   : > { %v507_v17 = vmul.f32 %v1041_v3, %v503_v14 }
 0x29c   : > { %535 = vperm.xlu1 %1021, %v1035_v0  }
 0x29d   : > { %540 = vperm.xlu0 %1020, %v1037_v1  }
 0x2a0   : > { %545 = vperm.xlu1 %1021, %v1039_v2  }
 0x2a4   : > { %550 = vperm.xlu1 %1021, %v1041_v3  }
 0x310   : > { %v510_v6 = vpop.xlane.xlu1 %509 }
 0x311   : > { %v520_v9 = vadd.f32 %v510_v6, %v504_v5 }
 0x313   : > { %525 = vst.msk [vmem:[#allocation3] sm:$0xff] %vm329_vm1, %v520_v9 }
 0x314   : > { %v516_v12 = vpop.xlane.xlu1 %515  ;;  %v513_v13 = vpop.xlane.xlu0 %512 }
 0x315   : > { %v522_v15 = vadd.f32 %v516_v12, %v506_v10  ;;  %v521_v16 = vadd.f32 %v513_v13, %v505_v11 }
 0x317   : > { %527 = vst.msk [vmem:[#allocation3 + $0x10] sm:$0xff] %vm329_vm1, %v522_v15  ;;  %526 = vst.msk [vmem:[#allocation3 + $0x8] sm:$0xff] %vm329_vm1, %v521_v16 }
 0x318   : > { %v519_v18 = vpop.xlane.xlu1 %518 }
 0x319   : > { %v523_v19 = vadd.f32 %v519_v18, %v507_v17 }
 0x31a   : > { %v639_v20 = vld [vmem:[#allocation3] sm:$0xff] }
 0x31b   : > { %528 = vst.msk [vmem:[#allocation3 + $0x18] sm:$0xff] %vm329_vm1, %v523_v19  ;;  %1042 = vrcp.f32 %v639_v20 }
 0x31c   : > { %v536_v28 = vpop.permute.xlu1 %535  ;;  %v541_v35 = vpop.permute.xlu0 %540 }
 0x31d   : > { %v553_v37 = vmul.f32 %v536_v28, %v529_v31  ;;  %v554_v42 = vmul.f32 %v541_v35, %v530_v34 }
 0x31e   : > { %v640_v21 = vld [vmem:[#allocation3 + $0x8] sm:$0xff]  ;;  %v641_v22 = vld [vmem:[#allocation3 + $0x10] sm:$0xff] }
 0x31f   : > { %1044 = vrcp.f32 %v640_v21 }
 0x320   : > { %1046 = vrcp.f32 %v641_v22  ;;  %v546_v29 = vpop.permute.xlu1 %545 }
 0x321   : > { %v555_v36 = vmul.f32 %v546_v29, %v531_v30 }
 0x322   : > { %v642_v23 = vld [vmem:[#allocation3 + $0x18] sm:$0xff] }
 0x323   : > { %1048 = vrcp.f32 %v642_v23 }
 0x324   : > { %v551_v33 = vpop.permute.xlu1 %550 }
 0x325   : > { %v1043_v24 = vpop.eup %1042  ;;  %v556_v39 = vmul.f32 %v551_v33, %v532_v32 }
 0x326   : > { %649 = vperm.xlu1 %1021, %v1043_v24  }
 0x329   : > { %v1045_v25 = vpop.eup %1044 }
 0x32a   : > { %v1047_v26 = vpop.eup %1046  ;;  %654 = vperm.xlu0 %1020, %v1045_v25  }
 0x32b   : > { %659 = vperm.xlu1 %1021, %v1047_v26  }
 0x32d   : > { %v1049_v27 = vpop.eup %1048 }
 0x32e   : > { %664 = vperm.xlu0 %1020, %v1049_v27  }
 0x35f   : > { %v922_v38 = vpop.f32.mrb[0].mxu1 }
 0x360   : > { %v622_v40 = vadd.f32 %v922_v38, %v555_v36  ;;  %v605_v41 = vpop.f32.mrb[1].mxu1 }
 0x361   : > { %v620_v43 = vadd.f32 %v605_v41, %v553_v37  ;;  %v923_v44 = vpop.f32.mrb[2].mxu1 }
 0x362   : > { %626 = vst.msk [vmem:[#allocation4 + $0x10] sm:$0xff] %vm338_vm0, %v622_v40  ;;  %v623_v45 = vadd.f32 %v923_v44, %v556_v39  ;;  %v608_v46 = vpop.f32.mrb[3].mxu1 }
 0x363   : > { %624 = vst.msk [vmem:[#allocation4] sm:$0xff] %vm338_vm0, %v620_v43  ;;  %v621_v47 = vadd.f32 %v608_v46, %v554_v42 }
 0x364   : > { %627 = vst.msk [vmem:[#allocation4 + $0x18] sm:$0xff] %vm338_vm0, %v623_v45 }
 0x365   : > { %625 = vst.msk [vmem:[#allocation4 + $0x8] sm:$0xff] %vm338_vm0, %v621_v47 }
 0x369   : > { %v637_v55 = vld [vmem:[#allocation4 + $0x10] sm:$0xff] }
 0x36a   : > { %v635_v48 = vld [vmem:[#allocation4] sm:$0xff] }
 0x36b   : > { %v638_v61 = vld [vmem:[#allocation4 + $0x18] sm:$0xff] }
 0x36c   : > { %v636_v52 = vld [vmem:[#allocation4 + $0x8] sm:$0xff] }
 0x3a5   : > { %v650_v49 = vpop.permute.xlu1 %649 }
 0x3a6   : > { %v667_v50 = vmul.f32 %v650_v49, %v635_v48 }
 0x3a8   : > { %v902_v51 = vpack.c.bf16 %v667_v50, %v667_v50 }
 0x3a9   : > { %v655_v53 = vpop.permute.xlu0 %654 }
 0x3aa   : > { %688 = vst.msk [vmem:[%s319_s9] sm:$0xf] %vm687_vm4, %v902_v51  ;;  %v668_v54 = vmul.f32 %v655_v53, %v636_v52  ;;  %v660_v56 = vpop.permute.xlu1 %659 }
 0x3ab   : > { %v669_v57 = vmul.f32 %v660_v56, %v637_v55 }
 0x3ac   : > { %v903_v58 = vpack.c.bf16 %v668_v54, %v668_v54 }
 0x3ad   : > { %v904_v59 = vpack.c.bf16 %v669_v57, %v669_v57  ;;  %v665_v60 = vpop.permute.xlu0 %664 }
 0x3ae   : > { %689 = vst.msk [vmem:[%s319_s9 + $0x4] sm:$0xf] %vm687_vm4, %v903_v58  ;;  %v670_v62 = vmul.f32 %v665_v60, %v638_v61 }
 0x3af   : > { %690 = vst.msk [vmem:[%s319_s9 + $0x8] sm:$0xf] %vm687_vm4, %v904_v59 }
 0x3b0   : > { %v905_v63 = vpack.c.bf16 %v670_v62, %v670_v62 }
 0x3b2   : > { %691 = vst.msk [vmem:[%s319_s9 + $0xc] sm:$0xf] %vm687_vm4, %v905_v63 }
 0x3b3   : > { %1153 = shalt.err (!%p1150_p13)
}
 0x3b4   : > { %s1154_s12 = scalar_lea.hbm %s1574_s8, 256  ;;  %s1158_s14 = scalar_lea.hbm %s1632_s3, 1024 }
 0x3b5   : > { %p1155_p10 = scmp.ne.s32.totalorder %s1574_s8, %s1154_s12  ;;  %p1159_p5 = scmp.lt.u32.totalorder %s1574_s8, %s1632_s3 }
 0x3b6   : > { %p1160_p2 = scmp.lt.u32.totalorder %s1158_s14, %s1154_s12  ;;  %p1162_p0 = scmp.lt.u32.totalorder %s1154_s12, %s1574_s8 }
 0x3b7   : > { %p1156_p12 = pnand %p1155_p10, %p1667_p6 }
 0x3b8   : > { %p1161_p1 = por %p1160_p2, %p1159_p5 }
 0x3b9   : > { %p1157_p3 = pneg %p1156_p12 }
 0x3ba   : > { %p1163_p8 = por %p1162_p0, %p1161_p1 }
 0x3bc   : > { %p1164_p9 = pnand %p1163_p8, %p1157_p3 }
 0x3be   : > { %1167 = shalt.err (!%p1164_p9)
}
 0x3bf   : > { %s1253_s26 = smov 64   ;;  %s1254_s20 = smov 4  }
 0x3c0   : > { %931 = dma.vmem_to_hbm [thread:$0]  (%p1667_p6), %s1567_s21, 256, %s1574_s8, %s693_s1, %s1253_s26, %s1253_s26, %s1254_s20  }
 0x3c1 PF: > { %s1668_s27 = sld [smem:[#allocation15_spill]]  ;;  %s1669_s30 = sld [smem:[#allocation19_spill]] }
 0x3c2   : > { %p948_p4 = scmp.ge.s32.totalorder %s1242_s19, 2 }
 0x3c7   : > { %s725_s4 = sand.u32 1, %s1668_s27   ;;  %p1670_p7 = scmp.ne.s32.totalorder %s1669_s30, 0 }
 0x3c8   : > { %s726_s9 = scalar_lea.sflag [#allocation7], %s725_s4 }
 0x3c9   : > { %p944_p11 = pnand %p948_p4, %p1670_p7 }
 0x3cb   : > { %1209 = dma.done.wait (!%p944_p11), %s726_s9, 256  }
 0x3cc   : > { %1211 = vsyncadd (!%p944_p11), %s726_s9, 4294967040  ;;  %s22_s19 = sadd.s32 1, %s1242_s19   ;;  %s1671_s11 = sld [smem:[#allocation16_spill]] }
 0x3cd   : > { %p19_p13 = scmp.ge.s32.totalorder %s22_s19, 6   ;;  %s1672_s14 = sld [smem:[#allocation20_spill]] }
 0x3ce   : > { %s1673_s28 = sld [smem:[#allocation17_spill]]  ;;  %s1674_s25 = sld [smem:[#allocation18_spill]] }
 0x3cf   : > { %s1675_s12 = smov %s1218_s13  ;;  %s1677_s15 = smov %s1234_s17 }
 0x3d0   : > { %s1678_s16 = smov %s1238_s18  ;;  %21 = sbr.rel (!%p19_p13) target bundleno = 11 (0xb), region = 109 }
 0x3d2   : > { %s1676_s13 = smov %s1671_s11 }
 0x3d4   : > { %s1679_s17 = smov %s1673_s28  ;;  %s1680_s18 = smov %s1674_s25 }
 0x3d7   :  { %731 = vsyncpa [#allocation6], 1 }
 0x3d8   :  { %733 = vsyncpa [#allocation6 + $0x1], 1 }
 0x3d9   :  { %734 = vsyncpa [#allocation9], 1 }
 0x3da   :  { %736 = vsyncpa [#allocation9 + $0x1], 1 }
 0x3db   :  { %737 = vsyncpa [#allocation7], 1 }
 0x3dc   :  { %739 = vsyncpa [#allocation7 + $0x1], 1 }

</bundles_post_ra>
